<compile_context>
chip_gen: v5e
topology: v5e:2x2
jax: 0.10.0
libtpu: 0.0.40
codegen_flags: <defaults>
</compile_context>

<pallas_src>
import jax
import jax.numpy as jnp
from jax.experimental import pallas as pl
from jax.experimental.pallas import tpu as pltpu

NUM_ITER = 3
FINAL_DC = True
RESNET_FACTOR = 1.0


def _round_up(x, m):
    return ((x + m - 1) // m) * m


def _vmem_cap_bytes():
    """Generation-aware VMEM ceiling with headroom (v7x: ~48 MiB of 64; v5e/v6e: ~96 MiB)."""
    try:
        phys = int(pltpu.get_tpu_info().vmem_capacity_bytes)
    except Exception:
        phys = 128 << 20
    return max(32 << 20, (phys * 3) // 4)


def _choose_batch_tiling(bc, tile_cap=256, min_split_tile=32):
    """Pad BC only to a multiple of 8 (f32 sublane) and pick a tile that divides the
    padded count exactly (no dead full-tile padding). Prefer an even number of tiles
    so both v7x TensorCores get work; ties go to the largest tile (amortizes the
    ~0.35us per-grid-step overhead and MXU fill/drain)."""
    bc_pad = _round_up(bc, 8)
    cands = [t for t in range(8, min(tile_cap, bc_pad) + 1, 8) if bc_pad % t == 0]
    even = [t for t in cands if (bc_pad // t) % 2 == 0 and t >= min_split_tile]
    tile = max(even) if even else max(cands)
    return bc_pad, tile


def iterative_net_kernel(lam_ref, y_ref, a_ref, at_ref, w1_ref, b1_ref, w2_ref,
                         b2_ref, out_ref):
    A = a_ref[...]        # (M, N)   bf16, resident across the grid
    At = at_ref[...]      # (N, M)   bf16, resident
    W1 = w1_ref[...]      # (N, Hp)  bf16, resident
    W2 = w2_ref[...]      # (Hp, N)  bf16, resident
    b1 = b1_ref[...]      # (1, Hp)  f32  (added via implicit sublane broadcast)
    b2 = b2_ref[...]      # (1, N)   f32
    y = y_ref[...]        # (T, M)   f32, pipelined batch tile

    # inverter: xinv = y @ A   (crude adjoint inversion)
    xinv = jnp.dot(y.astype(jnp.bfloat16), A, preferred_element_type=jnp.float32)

    for it in range(NUM_ITER):                       # static unroll (num_iter=3)
        # subnet(xinv) = relu(x W1 + b1) W2 + b2
        h = jnp.dot(xinv.astype(jnp.bfloat16), W1,
                    preferred_element_type=jnp.float32)
        h = jnp.maximum(h + b1, 0.0)
        sub = jnp.dot(h.astype(jnp.bfloat16), W2,
                      preferred_element_type=jnp.float32) + b2

        if RESNET_FACTOR != 1.0:                     # compile-time constant (== 1.0)
            xinv = RESNET_FACTOR * xinv + sub
        else:
            xinv = xinv + sub

        if FINAL_DC or it < NUM_ITER - 1:
            # data consistency: x <- x - lam[it] * A^T (A x - y)
            res = jnp.dot(xinv.astype(jnp.bfloat16), At,
                          preferred_element_type=jnp.float32) - y           # (T, M)
            corr = jnp.dot(res.astype(jnp.bfloat16), A,
                           preferred_element_type=jnp.float32)              # (T, N)
            xinv = xinv - lam_ref[it] * corr

    out_ref[...] = xinv


def _build_pallas_call(M, N, HIDp, bc_pad, tile_bc, vmem_limit, buffered_weights):
    num_tiles = bc_pad // tile_bc

    def wspec(shape):
        # Resident operand: constant index_map; single buffer when supported.
        if buffered_weights:
            return pl.BlockSpec(shape, lambda i, lam: (0, 0),
                                pipeline_mode=pl.Buffered(1))
        return pl.BlockSpec(shape, lambda i, lam: (0, 0))

    grid_spec = pltpu.PrefetchScalarGridSpec(
        num_scalar_prefetch=1,                       # lam -> SMEM
        grid=(num_tiles,),
        in_specs=[
            pl.BlockSpec((tile_bc, M), lambda i, lam: (i, 0)),   # y (pipelined)
            wspec((M, N)),        # A
            wspec((N, M)),        # A^T
            wspec((N, HIDp)),     # W1
            wspec((1, HIDp)),     # b1
            wspec((HIDp, N)),     # W2
            wspec((1, N)),        # b2
        ],
        out_specs=pl.BlockSpec((tile_bc, N), lambda i, lam: (i, 0)),
    )
    return pl.pallas_call(
        iterative_net_kernel,
        out_shape=jax.ShapeDtypeStruct((bc_pad, N), jnp.float32),
        grid_spec=grid_spec,
        compiler_params=pltpu.CompilerParams(
            dimension_semantics=("parallel",),       # independent batch tiles (megacore)
            vmem_limit_bytes=vmem_limit,
        ),
    )


def iterative_net_forward(inp, A, W1, b1, W2, b2, lam, img_hw, tile_bc_max=256):
    B, C, Ha, Wa = inp.shape
    M, N = A.shape
    H, Wimg = img_hw
    assert Ha * Wa == M and H * Wimg == N

    BC = B * C
    y = inp.reshape(BC, M).astype(jnp.float32)

    # bf16 weights (MXU peak path); accumulation stays f32 inside the kernel.
    A_bf = A.astype(jnp.bfloat16)
    At_bf = A_bf.T                                  # resident A^T (wrapper-side, one time)

    # Pad subnet hidden width to a full lane (128): exact (zero pad), unmasked stores,
    # full MXU column utilization.
    HID = W1.shape[1]
    HIDp = max(128, _round_up(HID, 128))
    W1p = jnp.zeros((N, HIDp), jnp.bfloat16).at[:, :HID].set(W1.astype(jnp.bfloat16))
    W2p = jnp.zeros((HIDp, N), jnp.bfloat16).at[:HID, :].set(W2.astype(jnp.bfloat16))
    b1p = jnp.zeros((1, HIDp), jnp.float32).at[:, :HID].set(
        b1.reshape(1, HID).astype(jnp.float32))
    b2r = b2.reshape(1, N).astype(jnp.float32)

    # Batch tiling: pad to multiple of 8 only; tile divides the padded count exactly.
    bc_pad, tile_bc = _choose_batch_tiling(BC, tile_bc_max)
    if bc_pad != BC:
        y = jnp.concatenate([y, jnp.zeros((bc_pad - BC, M), jnp.float32)], axis=0)

    lam = jnp.asarray(lam, jnp.float32).reshape(NUM_ITER)

    # VMEM budget: resident weights (worst case 2x for the non-Buffered fallback),
    # double-buffered y/out tiles, f32+bf16 intermediates, headroom; generation-aware cap.
    weight_bytes = (2 * M * N + 2 * N * HIDp) * 2 + (HIDp + N) * 4
    tile_io_bytes = tile_bc * (M + N) * 4
    inter_bytes = tile_bc * (2 * N + HIDp + 2 * M) * 4 + tile_bc * (N + HIDp + M) * 2
    est = 2 * weight_bytes + 2 * tile_io_bytes + 4 * inter_bytes + (8 << 20)
    vmem_limit = int(min(max(est, 32 << 20), _vmem_cap_bytes()))

    args = (lam, y, A_bf, At_bf, W1p, b1p, W2p, b2r)
    try:
        call = _build_pallas_call(M, N, HIDp, bc_pad, tile_bc, vmem_limit,
                                  buffered_weights=True)
        out = jax.block_until_ready(call(*args))
    except Exception:
        # Fallback: default double-buffered resident blocks (pipeline_mode unsupported).
        call = _build_pallas_call(M, N, HIDp, bc_pad, tile_bc, vmem_limit,
                                  buffered_weights=False)
        out = jax.block_until_ready(call(*args))

    # Drop padded rows before reshaping back to NCHW.
    return out[:BC].reshape(B, C, H, Wimg)


def iterative_net_reference(inp, A, W1, b1, W2, b2, lam, img_hw, emulate_bf16=False):
    """Pure-JAX reference mirroring IterativeNet.forward semantics (unpadded).
    With emulate_bf16=True the matmul operands are rounded to bf16 exactly like the
    kernel (f32 accumulation), isolating structural bugs from expected bf16 rounding."""
    B, C, Ha, Wa = inp.shape
    M, N = A.shape
    H, Wimg = img_hw
    y = inp.reshape(B * C, M).astype(jnp.float32)

    def dot(a, b):
        if emulate_bf16:
            return jnp.dot(a.astype(jnp.bfloat16), b.astype(jnp.bfloat16),
                           preferred_element_type=jnp.float32)
        return jnp.dot(a, b, preferred_element_type=jnp.float32)

    xinv = dot(y, A)
    for it in range(NUM_ITER):
        sub = dot(jnp.maximum(dot(xinv, W1) + b1, 0.0), W2) + b2
        xinv = (RESNET_FACTOR * xinv if RESNET_FACTOR != 1.0 else xinv) + sub
        if FINAL_DC or it < NUM_ITER - 1:
            xinv = xinv - lam[it] * dot(dot(xinv, A.T) - y, A)
    return xinv.reshape(B, C, H, Wimg)


if __name__ == "__main__":
    # Small, deterministic shapes
    H, Wimg = 16, 16        # image size    -> N = 256
    Ha, Wa = 8, 16          # sinogram size -> M = 128
    N, M = H * Wimg, Ha * Wa
    HID = 64                # subnet hidden width (padded to 128 internally)

    key = jax.random.PRNGKey(0)
    kA, kW1, kb1, kW2, kb2 = jax.random.split(key, 5)

    A = jax.random.normal(kA, (M, N), jnp.float32) / jnp.sqrt(N)
    W1 = jax.random.normal(kW1, (N, HID), jnp.float32) * 0.05
    b1 = jax.random.normal(kb1, (1, HID), jnp.float32) * 0.01
    W2 = jax.random.normal(kW2, (HID, N), jnp.float32) * 0.05
    b2 = jax.random.normal(kb2, (1, N), jnp.float32) * 0.01
    lam = jnp.full((NUM_ITER,), 0.1, dtype=jnp.float32)

    # Two configs: BC=8 -> single 8-row tile; BC=144 -> 2 x 72-row tiles (even split
    # for the two v7x TensorCores, no dead padded rows).
    for (B, C) in [(2, 4), (18, 8)]:
        kx = jax.random.fold_in(key, B * 1000 + C)
        inp = jax.random.normal(kx, (B, C, Ha, Wa), jnp.float32)   # measurements y

        out = iterative_net_forward(inp, A, W1, b1, W2, b2, lam, (H, Wimg))
        out = jax.block_until_ready(out)
        assert out.shape == (B, C, H, Wimg)

        # Tight check vs. reference applying the same bf16 casts (structural correctness).
        ref_bf = iterative_net_reference(inp, A, W1, b1, W2, b2, lam, (H, Wimg),
                                         emulate_bf16=True)
        assert jnp.allclose(out, ref_bf, rtol=2e-3, atol=2e-3), \
            f"mismatch vs bf16-emulating reference for B={B}, C={C}"

        # Loose sanity check vs. exact f32 reference (bf16 MXU path changes rounding).
        ref_f32 = iterative_net_reference(inp, A, W1, b1, W2, b2, lam, (H, Wimg),
                                          emulate_bf16=False)
        assert jnp.allclose(out, ref_f32, rtol=1e-1, atol=1e-1), \
            f"drift vs f32 reference too large for B={B}, C={C}"

    print("KERNEL_OK")
</pallas_src>

<mosaic_0001>
module attributes {stable_mosaic.version = 11 : i64} {
  func.func @iterative_net_kernel(%arg0: i32, %arg1: memref<3xf32, #tpu.memory_space<smem>>, %arg2: memref<8x128xf32, #tpu.memory_space<vmem>>, %arg3: memref<128x256xbf16, #tpu.memory_space<vmem>>, %arg4: memref<256x128xbf16, #tpu.memory_space<vmem>>, %arg5: memref<256x128xbf16, #tpu.memory_space<vmem>>, %arg6: memref<1x128xf32, #tpu.memory_space<vmem>>, %arg7: memref<128x256xbf16, #tpu.memory_space<vmem>>, %arg8: memref<1x256xf32, #tpu.memory_space<vmem>>, %arg9: memref<8x256xf32, #tpu.memory_space<vmem>>) attributes {dimension_semantics = [#tpu.dimension_semantics<parallel>], iteration_bounds = array<i64: 1>, scalar_prefetch = 1 : i64, scratch_operands = 0 : i64, tpu.core_type = #tpu.core_type<tc>, window_params = [{transform_indices = @transform_0, window_bounds = array<i64: 8, 128>}, {pipeline_mode = #tpu.pipeline_mode<synchronous>, transform_indices = @transform_1, window_bounds = array<i64: 128, 256>}, {pipeline_mode = #tpu.pipeline_mode<synchronous>, transform_indices = @transform_2, window_bounds = array<i64: 256, 128>}, {pipeline_mode = #tpu.pipeline_mode<synchronous>, transform_indices = @transform_3, window_bounds = array<i64: 256, 128>}, {pipeline_mode = #tpu.pipeline_mode<synchronous>, transform_indices = @transform_4, window_bounds = array<i64: 1, 128>}, {pipeline_mode = #tpu.pipeline_mode<synchronous>, transform_indices = @transform_5, window_bounds = array<i64: 128, 256>}, {pipeline_mode = #tpu.pipeline_mode<synchronous>, transform_indices = @transform_6, window_bounds = array<i64: 1, 256>}, {transform_indices = @transform_7, window_bounds = array<i64: 8, 256>}]} {
    %c0 = arith.constant 0 : index
    %c0_0 = arith.constant 0 : index
    %0 = vector.load %arg3[%c0, %c0_0] : memref<128x256xbf16, #tpu.memory_space<vmem>>, vector<128x256xbf16>
    %c0_1 = arith.constant 0 : index
    %c0_2 = arith.constant 0 : index
    %1 = vector.load %arg4[%c0_1, %c0_2] : memref<256x128xbf16, #tpu.memory_space<vmem>>, vector<256x128xbf16>
    %c0_3 = arith.constant 0 : index
    %c0_4 = arith.constant 0 : index
    %2 = vector.load %arg5[%c0_3, %c0_4] : memref<256x128xbf16, #tpu.memory_space<vmem>>, vector<256x128xbf16>
    %c0_5 = arith.constant 0 : index
    %c0_6 = arith.constant 0 : index
    %3 = vector.load %arg7[%c0_5, %c0_6] : memref<128x256xbf16, #tpu.memory_space<vmem>>, vector<128x256xbf16>
    %c0_7 = arith.constant 0 : index
    %c0_8 = arith.constant 0 : index
    %4 = vector.load %arg6[%c0_7, %c0_8] : memref<1x128xf32, #tpu.memory_space<vmem>>, vector<1x128xf32>
    %c0_9 = arith.constant 0 : index
    %c0_10 = arith.constant 0 : index
    %5 = vector.load %arg8[%c0_9, %c0_10] : memref<1x256xf32, #tpu.memory_space<vmem>>, vector<1x256xf32>
    %c0_11 = arith.constant 0 : index
    %c0_12 = arith.constant 0 : index
    %6 = vector.load %arg2[%c0_11, %c0_12] : memref<8x128xf32, #tpu.memory_space<vmem>>, vector<8x128xf32>
    %7 = arith.truncf %6 : vector<8x128xf32> to vector<8x128xbf16>
    %cst = arith.constant dense<0.000000e+00> : vector<8x256xf32>
    %8 = tpu.matmul %7, %0, %cst {dimension_numbers = #tpu.dot_dimension_numbers<[1], [0], [0], [1], [0, 0, 1, 1], [], []>} : vector<8x128xbf16>, vector<128x256xbf16>, vector<8x256xf32> -> vector<8x256xf32>
    %9 = arith.truncf %8 : vector<8x256xf32> to vector<8x256xbf16>
    %cst_13 = arith.constant dense<0.000000e+00> : vector<8x128xf32>
    %10 = tpu.matmul %9, %2, %cst_13 {dimension_numbers = #tpu.dot_dimension_numbers<[1], [0], [0], [1], [0, 0, 1, 1], [], []>} : vector<8x256xbf16>, vector<256x128xbf16>, vector<8x128xf32> -> vector<8x128xf32>
    %11 = vector.broadcast %4 : vector<1x128xf32> to vector<8x128xf32>
    %12 = arith.addf %10, %11 : vector<8x128xf32>
    %cst_14 = arith.constant 0.000000e+00 : f32
    %13 = vector.broadcast %cst_14 : f32 to vector<8x128xf32>
    %14 = arith.maximumf %12, %13 : vector<8x128xf32>
    %15 = arith.truncf %14 : vector<8x128xf32> to vector<8x128xbf16>
    %cst_15 = arith.constant dense<0.000000e+00> : vector<8x256xf32>
    %16 = tpu.matmul %15, %3, %cst_15 {dimension_numbers = #tpu.dot_dimension_numbers<[1], [0], [0], [1], [0, 0, 1, 1], [], []>} : vector<8x128xbf16>, vector<128x256xbf16>, vector<8x256xf32> -> vector<8x256xf32>
    %17 = vector.broadcast %5 : vector<1x256xf32> to vector<8x256xf32>
    %18 = arith.addf %16, %17 : vector<8x256xf32>
    %19 = arith.addf %8, %18 : vector<8x256xf32>
    %20 = arith.truncf %19 : vector<8x256xf32> to vector<8x256xbf16>
    %cst_16 = arith.constant dense<0.000000e+00> : vector<8x128xf32>
    %21 = tpu.matmul %20, %1, %cst_16 {dimension_numbers = #tpu.dot_dimension_numbers<[1], [0], [0], [1], [0, 0, 1, 1], [], []>} : vector<8x256xbf16>, vector<256x128xbf16>, vector<8x128xf32> -> vector<8x128xf32>
    %22 = arith.subf %21, %6 : vector<8x128xf32>
    %23 = arith.truncf %22 : vector<8x128xf32> to vector<8x128xbf16>
    %cst_17 = arith.constant dense<0.000000e+00> : vector<8x256xf32>
    %24 = tpu.matmul %23, %0, %cst_17 {dimension_numbers = #tpu.dot_dimension_numbers<[1], [0], [0], [1], [0, 0, 1, 1], [], []>} : vector<8x128xbf16>, vector<128x256xbf16>, vector<8x256xf32> -> vector<8x256xf32>
    %c0_18 = arith.constant 0 : index
    %25 = memref.load %arg1[%c0_18] : memref<3xf32, #tpu.memory_space<smem>>
    %26 = vector.broadcast %25 : f32 to vector<8x256xf32>
    %27 = arith.mulf %26, %24 : vector<8x256xf32>
    %28 = arith.subf %19, %27 : vector<8x256xf32>
    %29 = arith.truncf %28 : vector<8x256xf32> to vector<8x256xbf16>
    %cst_19 = arith.constant dense<0.000000e+00> : vector<8x128xf32>
    %30 = tpu.matmul %29, %2, %cst_19 {dimension_numbers = #tpu.dot_dimension_numbers<[1], [0], [0], [1], [0, 0, 1, 1], [], []>} : vector<8x256xbf16>, vector<256x128xbf16>, vector<8x128xf32> -> vector<8x128xf32>
    %31 = vector.broadcast %4 : vector<1x128xf32> to vector<8x128xf32>
    %32 = arith.addf %30, %31 : vector<8x128xf32>
    %cst_20 = arith.constant 0.000000e+00 : f32
    %33 = vector.broadcast %cst_20 : f32 to vector<8x128xf32>
    %34 = arith.maximumf %32, %33 : vector<8x128xf32>
    %35 = arith.truncf %34 : vector<8x128xf32> to vector<8x128xbf16>
    %cst_21 = arith.constant dense<0.000000e+00> : vector<8x256xf32>
    %36 = tpu.matmul %35, %3, %cst_21 {dimension_numbers = #tpu.dot_dimension_numbers<[1], [0], [0], [1], [0, 0, 1, 1], [], []>} : vector<8x128xbf16>, vector<128x256xbf16>, vector<8x256xf32> -> vector<8x256xf32>
    %37 = vector.broadcast %5 : vector<1x256xf32> to vector<8x256xf32>
    %38 = arith.addf %36, %37 : vector<8x256xf32>
    %39 = arith.addf %28, %38 : vector<8x256xf32>
    %40 = arith.truncf %39 : vector<8x256xf32> to vector<8x256xbf16>
    %cst_22 = arith.constant dense<0.000000e+00> : vector<8x128xf32>
    %41 = tpu.matmul %40, %1, %cst_22 {dimension_numbers = #tpu.dot_dimension_numbers<[1], [0], [0], [1], [0, 0, 1, 1], [], []>} : vector<8x256xbf16>, vector<256x128xbf16>, vector<8x128xf32> -> vector<8x128xf32>
    %42 = arith.subf %41, %6 : vector<8x128xf32>
    %43 = arith.truncf %42 : vector<8x128xf32> to vector<8x128xbf16>
    %cst_23 = arith.constant dense<0.000000e+00> : vector<8x256xf32>
    %44 = tpu.matmul %43, %0, %cst_23 {dimension_numbers = #tpu.dot_dimension_numbers<[1], [0], [0], [1], [0, 0, 1, 1], [], []>} : vector<8x128xbf16>, vector<128x256xbf16>, vector<8x256xf32> -> vector<8x256xf32>
    %c1 = arith.constant 1 : index
    %45 = memref.load %arg1[%c1] : memref<3xf32, #tpu.memory_space<smem>>
    %46 = vector.broadcast %45 : f32 to vector<8x256xf32>
    %47 = arith.mulf %46, %44 : vector<8x256xf32>
    %48 = arith.subf %39, %47 : vector<8x256xf32>
    %49 = arith.truncf %48 : vector<8x256xf32> to vector<8x256xbf16>
    %cst_24 = arith.constant dense<0.000000e+00> : vector<8x128xf32>
    %50 = tpu.matmul %49, %2, %cst_24 {dimension_numbers = #tpu.dot_dimension_numbers<[1], [0], [0], [1], [0, 0, 1, 1], [], []>} : vector<8x256xbf16>, vector<256x128xbf16>, vector<8x128xf32> -> vector<8x128xf32>
    %51 = vector.broadcast %4 : vector<1x128xf32> to vector<8x128xf32>
    %52 = arith.addf %50, %51 : vector<8x128xf32>
    %cst_25 = arith.constant 0.000000e+00 : f32
    %53 = vector.broadcast %cst_25 : f32 to vector<8x128xf32>
    %54 = arith.maximumf %52, %53 : vector<8x128xf32>
    %55 = arith.truncf %54 : vector<8x128xf32> to vector<8x128xbf16>
    %cst_26 = arith.constant dense<0.000000e+00> : vector<8x256xf32>
    %56 = tpu.matmul %55, %3, %cst_26 {dimension_numbers = #tpu.dot_dimension_numbers<[1], [0], [0], [1], [0, 0, 1, 1], [], []>} : vector<8x128xbf16>, vector<128x256xbf16>, vector<8x256xf32> -> vector<8x256xf32>
    %57 = vector.broadcast %5 : vector<1x256xf32> to vector<8x256xf32>
    %58 = arith.addf %56, %57 : vector<8x256xf32>
    %59 = arith.addf %48, %58 : vector<8x256xf32>
    %60 = arith.truncf %59 : vector<8x256xf32> to vector<8x256xbf16>
    %cst_27 = arith.constant dense<0.000000e+00> : vector<8x128xf32>
    %61 = tpu.matmul %60, %1, %cst_27 {dimension_numbers = #tpu.dot_dimension_numbers<[1], [0], [0], [1], [0, 0, 1, 1], [], []>} : vector<8x256xbf16>, vector<256x128xbf16>, vector<8x128xf32> -> vector<8x128xf32>
    %62 = arith.subf %61, %6 : vector<8x128xf32>
    %63 = arith.truncf %62 : vector<8x128xf32> to vector<8x128xbf16>
    %cst_28 = arith.constant dense<0.000000e+00> : vector<8x256xf32>
    %64 = tpu.matmul %63, %0, %cst_28 {dimension_numbers = #tpu.dot_dimension_numbers<[1], [0], [0], [1], [0, 0, 1, 1], [], []>} : vector<8x128xbf16>, vector<128x256xbf16>, vector<8x256xf32> -> vector<8x256xf32>
    %c2 = arith.constant 2 : index
    %65 = memref.load %arg1[%c2] : memref<3xf32, #tpu.memory_space<smem>>
    %66 = vector.broadcast %65 : f32 to vector<8x256xf32>
    %67 = arith.mulf %66, %64 : vector<8x256xf32>
    %68 = arith.subf %59, %67 : vector<8x256xf32>
    %c0_29 = arith.constant 0 : index
    %c0_30 = arith.constant 0 : index
    %69 = vector.load %arg9[%c0_29, %c0_30] : memref<8x256xf32, #tpu.memory_space<vmem>>, vector<8x256xf32>
    tpu.vector_store %arg9[%c0_29, %c0_30], %68 {strides = array<i32>} : memref<8x256xf32, #tpu.memory_space<vmem>>, vector<8x256xf32>,
    return
  }
  func.func @transform_0(%arg0: i32, %arg1: memref<3xf32, #tpu.memory_space<smem>>) -> (i32, i32) {
    %c0_i32 = arith.constant 0 : i32
    %c0_i32_0 = arith.constant 0 : i32
    return %arg0, %c0_i32 : i32, i32
  }
  func.func @transform_1(%arg0: i32, %arg1: memref<3xf32, #tpu.memory_space<smem>>) -> (i32, i32) {
    %c0_i32 = arith.constant 0 : i32
    %c0_i32_0 = arith.constant 0 : i32
    %c0_i32_1 = arith.constant 0 : i32
    return %c0_i32, %c0_i32_0 : i32, i32
  }
  func.func @transform_2(%arg0: i32, %arg1: memref<3xf32, #tpu.memory_space<smem>>) -> (i32, i32) {
    %c0_i32 = arith.constant 0 : i32
    %c0_i32_0 = arith.constant 0 : i32
    %c0_i32_1 = arith.constant 0 : i32
    return %c0_i32, %c0_i32_0 : i32, i32
  }
  func.func @transform_3(%arg0: i32, %arg1: memref<3xf32, #tpu.memory_space<smem>>) -> (i32, i32) {
    %c0_i32 = arith.constant 0 : i32
    %c0_i32_0 = arith.constant 0 : i32
    %c0_i32_1 = arith.constant 0 : i32
    return %c0_i32, %c0_i32_0 : i32, i32
  }
  func.func @transform_4(%arg0: i32, %arg1: memref<3xf32, #tpu.memory_space<smem>>) -> (i32, i32) {
    %c0_i32 = arith.constant 0 : i32
    %c0_i32_0 = arith.constant 0 : i32
    %c0_i32_1 = arith.constant 0 : i32
    return %c0_i32, %c0_i32_0 : i32, i32
  }
  func.func @transform_5(%arg0: i32, %arg1: memref<3xf32, #tpu.memory_space<smem>>) -> (i32, i32) {
    %c0_i32 = arith.constant 0 : i32
    %c0_i32_0 = arith.constant 0 : i32
    %c0_i32_1 = arith.constant 0 : i32
    return %c0_i32, %c0_i32_0 : i32, i32
  }
  func.func @transform_6(%arg0: i32, %arg1: memref<3xf32, #tpu.memory_space<smem>>) -> (i32, i32) {
    %c0_i32 = arith.constant 0 : i32
    %c0_i32_0 = arith.constant 0 : i32
    %c0_i32_1 = arith.constant 0 : i32
    return %c0_i32, %c0_i32_0 : i32, i32
  }
  func.func @transform_7(%arg0: i32, %arg1: memref<3xf32, #tpu.memory_space<smem>>) -> (i32, i32) {
    %c0_i32 = arith.constant 0 : i32
    %c0_i32_0 = arith.constant 0 : i32
    return %arg0, %c0_i32 : i32, i32
  }
}

module attributes {stable_mosaic.version = 11 : i64} {
  func.func @iterative_net_kernel(%arg0: i32, %arg1: memref<3xf32, #tpu.memory_space<smem>>, %arg2: memref<8x128xf32, #tpu.memory_space<vmem>>, %arg3: memref<128x256xbf16, #tpu.memory_space<vmem>>, %arg4: memref<256x128xbf16, #tpu.memory_space<vmem>>, %arg5: memref<256x128xbf16, #tpu.memory_space<vmem>>, %arg6: memref<1x128xf32, #tpu.memory_space<vmem>>, %arg7: memref<128x256xbf16, #tpu.memory_space<vmem>>, %arg8: memref<1x256xf32, #tpu.memory_space<vmem>>, %arg9: memref<8x256xf32, #tpu.memory_space<vmem>>) attributes {dimension_semantics = [#tpu.dimension_semantics<parallel>], iteration_bounds = array<i64: 1>, scalar_prefetch = 1 : i64, scratch_operands = 0 : i64, tpu.core_type = #tpu.core_type<tc>, window_params = [{transform_indices = @transform_0, window_bounds = array<i64: 8, 128>}, {pipeline_mode = #tpu.pipeline_mode<synchronous>, transform_indices = @transform_1, window_bounds = array<i64: 128, 256>}, {pipeline_mode = #tpu.pipeline_mode<synchronous>, transform_indices = @transform_2, window_bounds = array<i64: 256, 128>}, {pipeline_mode = #tpu.pipeline_mode<synchronous>, transform_indices = @transform_3, window_bounds = array<i64: 256, 128>}, {pipeline_mode = #tpu.pipeline_mode<synchronous>, transform_indices = @transform_4, window_bounds = array<i64: 1, 128>}, {pipeline_mode = #tpu.pipeline_mode<synchronous>, transform_indices = @transform_5, window_bounds = array<i64: 128, 256>}, {pipeline_mode = #tpu.pipeline_mode<synchronous>, transform_indices = @transform_6, window_bounds = array<i64: 1, 256>}, {transform_indices = @transform_7, window_bounds = array<i64: 8, 256>}]} {
    %c0 = arith.constant 0 : index
    %c0_0 = arith.constant 0 : index
    %0 = vector.load %arg3[%c0, %c0_0] : memref<128x256xbf16, #tpu.memory_space<vmem>>, vector<128x256xbf16>
    %c0_1 = arith.constant 0 : index
    %c0_2 = arith.constant 0 : index
    %1 = vector.load %arg4[%c0_1, %c0_2] : memref<256x128xbf16, #tpu.memory_space<vmem>>, vector<256x128xbf16>
    %c0_3 = arith.constant 0 : index
    %c0_4 = arith.constant 0 : index
    %2 = vector.load %arg5[%c0_3, %c0_4] : memref<256x128xbf16, #tpu.memory_space<vmem>>, vector<256x128xbf16>
    %c0_5 = arith.constant 0 : index
    %c0_6 = arith.constant 0 : index
    %3 = vector.load %arg7[%c0_5, %c0_6] : memref<128x256xbf16, #tpu.memory_space<vmem>>, vector<128x256xbf16>
    %c0_7 = arith.constant 0 : index
    %c0_8 = arith.constant 0 : index
    %4 = vector.load %arg6[%c0_7, %c0_8] : memref<1x128xf32, #tpu.memory_space<vmem>>, vector<1x128xf32>
    %c0_9 = arith.constant 0 : index
    %c0_10 = arith.constant 0 : index
    %5 = vector.load %arg8[%c0_9, %c0_10] : memref<1x256xf32, #tpu.memory_space<vmem>>, vector<1x256xf32>
    %c0_11 = arith.constant 0 : index
    %c0_12 = arith.constant 0 : index
    %6 = vector.load %arg2[%c0_11, %c0_12] : memref<8x128xf32, #tpu.memory_space<vmem>>, vector<8x128xf32>
    %7 = arith.truncf %6 : vector<8x128xf32> to vector<8x128xbf16>
    %cst = arith.constant dense<0.000000e+00> : vector<8x256xf32>
    %8 = tpu.matmul %7, %0, %cst {dimension_numbers = #tpu.dot_dimension_numbers<[1], [0], [0], [1], [0, 0, 1, 1], [], []>} : vector<8x128xbf16>, vector<128x256xbf16>, vector<8x256xf32> -> vector<8x256xf32>
    %9 = arith.truncf %8 : vector<8x256xf32> to vector<8x256xbf16>
    %cst_13 = arith.constant dense<0.000000e+00> : vector<8x128xf32>
    %10 = tpu.matmul %9, %2, %cst_13 {dimension_numbers = #tpu.dot_dimension_numbers<[1], [0], [0], [1], [0, 0, 1, 1], [], []>} : vector<8x256xbf16>, vector<256x128xbf16>, vector<8x128xf32> -> vector<8x128xf32>
    %11 = vector.broadcast %4 : vector<1x128xf32> to vector<8x128xf32>
    %12 = arith.addf %10, %11 : vector<8x128xf32>
    %cst_14 = arith.constant 0.000000e+00 : f32
    %13 = vector.broadcast %cst_14 : f32 to vector<8x128xf32>
    %14 = arith.maximumf %12, %13 : vector<8x128xf32>
    %15 = arith.truncf %14 : vector<8x128xf32> to vector<8x128xbf16>
    %cst_15 = arith.constant dense<0.000000e+00> : vector<8x256xf32>
    %16 = tpu.matmul %15, %3, %cst_15 {dimension_numbers = #tpu.dot_dimension_numbers<[1], [0], [0], [1], [0, 0, 1, 1], [], []>} : vector<8x128xbf16>, vector<128x256xbf16>, vector<8x256xf32> -> vector<8x256xf32>
    %17 = vector.broadcast %5 : vector<1x256xf32> to vector<8x256xf32>
    %18 = arith.addf %16, %17 : vector<8x256xf32>
    %19 = arith.addf %8, %18 : vector<8x256xf32>
    %20 = arith.truncf %19 : vector<8x256xf32> to vector<8x256xbf16>
    %cst_16 = arith.constant dense<0.000000e+00> : vector<8x128xf32>
    %21 = tpu.matmul %20, %1, %cst_16 {dimension_numbers = #tpu.dot_dimension_numbers<[1], [0], [0], [1], [0, 0, 1, 1], [], []>} : vector<8x256xbf16>, vector<256x128xbf16>, vector<8x128xf32> -> vector<8x128xf32>
    %22 = arith.subf %21, %6 : vector<8x128xf32>
    %23 = arith.truncf %22 : vector<8x128xf32> to vector<8x128xbf16>
    %cst_17 = arith.constant dense<0.000000e+00> : vector<8x256xf32>
    %24 = tpu.matmul %23, %0, %cst_17 {dimension_numbers = #tpu.dot_dimension_numbers<[1], [0], [0], [1], [0, 0, 1, 1], [], []>} : vector<8x128xbf16>, vector<128x256xbf16>, vector<8x256xf32> -> vector<8x256xf32>
    %c0_18 = arith.constant 0 : index
    %25 = memref.load %arg1[%c0_18] : memref<3xf32, #tpu.memory_space<smem>>
    %26 = vector.broadcast %25 : f32 to vector<8x256xf32>
    %27 = arith.mulf %26, %24 : vector<8x256xf32>
    %28 = arith.subf %19, %27 : vector<8x256xf32>
    %29 = arith.truncf %28 : vector<8x256xf32> to vector<8x256xbf16>
    %cst_19 = arith.constant dense<0.000000e+00> : vector<8x128xf32>
    %30 = tpu.matmul %29, %2, %cst_19 {dimension_numbers = #tpu.dot_dimension_numbers<[1], [0], [0], [1], [0, 0, 1, 1], [], []>} : vector<8x256xbf16>, vector<256x128xbf16>, vector<8x128xf32> -> vector<8x128xf32>
    %31 = vector.broadcast %4 : vector<1x128xf32> to vector<8x128xf32>
    %32 = arith.addf %30, %31 : vector<8x128xf32>
    %cst_20 = arith.constant 0.000000e+00 : f32
    %33 = vector.broadcast %cst_20 : f32 to vector<8x128xf32>
    %34 = arith.maximumf %32, %33 : vector<8x128xf32>
    %35 = arith.truncf %34 : vector<8x128xf32> to vector<8x128xbf16>
    %cst_21 = arith.constant dense<0.000000e+00> : vector<8x256xf32>
    %36 = tpu.matmul %35, %3, %cst_21 {dimension_numbers = #tpu.dot_dimension_numbers<[1], [0], [0], [1], [0, 0, 1, 1], [], []>} : vector<8x128xbf16>, vector<128x256xbf16>, vector<8x256xf32> -> vector<8x256xf32>
    %37 = vector.broadcast %5 : vector<1x256xf32> to vector<8x256xf32>
    %38 = arith.addf %36, %37 : vector<8x256xf32>
    %39 = arith.addf %28, %38 : vector<8x256xf32>
    %40 = arith.truncf %39 : vector<8x256xf32> to vector<8x256xbf16>
    %cst_22 = arith.constant dense<0.000000e+00> : vector<8x128xf32>
    %41 = tpu.matmul %40, %1, %cst_22 {dimension_numbers = #tpu.dot_dimension_numbers<[1], [0], [0], [1], [0, 0, 1, 1], [], []>} : vector<8x256xbf16>, vector<256x128xbf16>, vector<8x128xf32> -> vector<8x128xf32>
    %42 = arith.subf %41, %6 : vector<8x128xf32>
    %43 = arith.truncf %42 : vector<8x128xf32> to vector<8x128xbf16>
    %cst_23 = arith.constant dense<0.000000e+00> : vector<8x256xf32>
    %44 = tpu.matmul %43, %0, %cst_23 {dimension_numbers = #tpu.dot_dimension_numbers<[1], [0], [0], [1], [0, 0, 1, 1], [], []>} : vector<8x128xbf16>, vector<128x256xbf16>, vector<8x256xf32> -> vector<8x256xf32>
    %c1 = arith.constant 1 : index
    %45 = memref.load %arg1[%c1] : memref<3xf32, #tpu.memory_space<smem>>
    %46 = vector.broadcast %45 : f32 to vector<8x256xf32>
    %47 = arith.mulf %46, %44 : vector<8x256xf32>
    %48 = arith.subf %39, %47 : vector<8x256xf32>
    %49 = arith.truncf %48 : vector<8x256xf32> to vector<8x256xbf16>
    %cst_24 = arith.constant dense<0.000000e+00> : vector<8x128xf32>
    %50 = tpu.matmul %49, %2, %cst_24 {dimension_numbers = #tpu.dot_dimension_numbers<[1], [0], [0], [1], [0, 0, 1, 1], [], []>} : vector<8x256xbf16>, vector<256x128xbf16>, vector<8x128xf32> -> vector<8x128xf32>
    %51 = vector.broadcast %4 : vector<1x128xf32> to vector<8x128xf32>
    %52 = arith.addf %50, %51 : vector<8x128xf32>
    %cst_25 = arith.constant 0.000000e+00 : f32
    %53 = vector.broadcast %cst_25 : f32 to vector<8x128xf32>
    %54 = arith.maximumf %52, %53 : vector<8x128xf32>
    %55 = arith.truncf %54 : vector<8x128xf32> to vector<8x128xbf16>
    %cst_26 = arith.constant dense<0.000000e+00> : vector<8x256xf32>
    %56 = tpu.matmul %55, %3, %cst_26 {dimension_numbers = #tpu.dot_dimension_numbers<[1], [0], [0], [1], [0, 0, 1, 1], [], []>} : vector<8x128xbf16>, vector<128x256xbf16>, vector<8x256xf32> -> vector<8x256xf32>
    %57 = vector.broadcast %5 : vector<1x256xf32> to vector<8x256xf32>
    %58 = arith.addf %56, %57 : vector<8x256xf32>
    %59 = arith.addf %48, %58 : vector<8x256xf32>
    %60 = arith.truncf %59 : vector<8x256xf32> to vector<8x256xbf16>
    %cst_27 = arith.constant dense<0.000000e+00> : vector<8x128xf32>
    %61 = tpu.matmul %60, %1, %cst_27 {dimension_numbers = #tpu.dot_dimension_numbers<[1], [0], [0], [1], [0, 0, 1, 1], [], []>} : vector<8x256xbf16>, vector<256x128xbf16>, vector<8x128xf32> -> vector<8x128xf32>
    %62 = arith.subf %61, %6 : vector<8x128xf32>
    %63 = arith.truncf %62 : vector<8x128xf32> to vector<8x128xbf16>
    %cst_28 = arith.constant dense<0.000000e+00> : vector<8x256xf32>
    %64 = tpu.matmul %63, %0, %cst_28 {dimension_numbers = #tpu.dot_dimension_numbers<[1], [0], [0], [1], [0, 0, 1, 1], [], []>} : vector<8x128xbf16>, vector<128x256xbf16>, vector<8x256xf32> -> vector<8x256xf32>
    %c2 = arith.constant 2 : index
    %65 = memref.load %arg1[%c2] : memref<3xf32, #tpu.memory_space<smem>>
    %66 = vector.broadcast %65 : f32 to vector<8x256xf32>
    %67 = arith.mulf %66, %64 : vector<8x256xf32>
    %68 = arith.subf %59, %67 : vector<8x256xf32>
    %c0_29 = arith.constant 0 : index
    %c0_30 = arith.constant 0 : index
    %69 = vector.load %arg9[%c0_29, %c0_30] : memref<8x256xf32, #tpu.memory_space<vmem>>, vector<8x256xf32>
    tpu.vector_store %arg9[%c0_29, %c0_30], %68 {strides = array<i32>} : memref<8x256xf32, #tpu.memory_space<vmem>>, vector<8x256xf32>,
    return
  }
  func.func @transform_0(%arg0: i32, %arg1: memref<3xf32, #tpu.memory_space<smem>>) -> (i32, i32) {
    %c0_i32 = arith.constant 0 : i32
    %c0_i32_0 = arith.constant 0 : i32
    return %arg0, %c0_i32 : i32, i32
  }
  func.func @transform_1(%arg0: i32, %arg1: memref<3xf32, #tpu.memory_space<smem>>) -> (i32, i32) {
    %c0_i32 = arith.constant 0 : i32
    %c0_i32_0 = arith.constant 0 : i32
    %c0_i32_1 = arith.constant 0 : i32
    return %c0_i32, %c0_i32_0 : i32, i32
  }
  func.func @transform_2(%arg0: i32, %arg1: memref<3xf32, #tpu.memory_space<smem>>) -> (i32, i32) {
    %c0_i32 = arith.constant 0 : i32
    %c0_i32_0 = arith.constant 0 : i32
    %c0_i32_1 = arith.constant 0 : i32
    return %c0_i32, %c0_i32_0 : i32, i32
  }
  func.func @transform_3(%arg0: i32, %arg1: memref<3xf32, #tpu.memory_space<smem>>) -> (i32, i32) {
    %c0_i32 = arith.constant 0 : i32
    %c0_i32_0 = arith.constant 0 : i32
    %c0_i32_1 = arith.constant 0 : i32
    return %c0_i32, %c0_i32_0 : i32, i32
  }
  func.func @transform_4(%arg0: i32, %arg1: memref<3xf32, #tpu.memory_space<smem>>) -> (i32, i32) {
    %c0_i32 = arith.constant 0 : i32
    %c0_i32_0 = arith.constant 0 : i32
    %c0_i32_1 = arith.constant 0 : i32
    return %c0_i32, %c0_i32_0 : i32, i32
  }
  func.func @transform_5(%arg0: i32, %arg1: memref<3xf32, #tpu.memory_space<smem>>) -> (i32, i32) {
    %c0_i32 = arith.constant 0 : i32
    %c0_i32_0 = arith.constant 0 : i32
    %c0_i32_1 = arith.constant 0 : i32
    return %c0_i32, %c0_i32_0 : i32, i32
  }
  func.func @transform_6(%arg0: i32, %arg1: memref<3xf32, #tpu.memory_space<smem>>) -> (i32, i32) {
    %c0_i32 = arith.constant 0 : i32
    %c0_i32_0 = arith.constant 0 : i32
    %c0_i32_1 = arith.constant 0 : i32
    return %c0_i32, %c0_i32_0 : i32, i32
  }
  func.func @transform_7(%arg0: i32, %arg1: memref<3xf32, #tpu.memory_space<smem>>) -> (i32, i32) {
    %c0_i32 = arith.constant 0 : i32
    %c0_i32_0 = arith.constant 0 : i32
    return %arg0, %c0_i32 : i32, i32
  }
}

</mosaic_0001>

<bundles_post_ra>
// kernel: tpu_custom_call.1
= control target key start
LH: loop header
LB: loop body
LE: loop exit
PB: predicated region body
PF: predicated region fallthrough
CT: control target
= control target key end

     0   :  { %s1479_s30 = smov [#allocation3]   ;;  %s1936_s0 = inlined_call_operand.hbm [shape: f32[3], index: 0, kind: input, shape index: {}]   ;;  %s1937_s1 = inlined_call_operand.hbm [shape: f32[8,128], index: 1, kind: input, shape index: {}]   ;;  %s1938_s2 = inlined_call_operand.hbm [shape: bf16[128,256], index: 2, kind: input, shape index: {}]   ;;  %s1939_s3 = inlined_call_operand.hbm [shape: bf16[256,128], index: 3, kind: input, shape index: {}]   ;;  %s1940_s4 = inlined_call_operand.hbm [shape: bf16[256,128], index: 4, kind: input, shape index: {}]   ;;  %s1941_s5 = inlined_call_operand.vmem [shape: f32[1,128], index: 5, kind: input, shape index: {}]   ;;  %s1942_s6 = inlined_call_operand.hbm [shape: bf16[128,256], index: 6, kind: input, shape index: {}]   ;;  %s1943_s7 = inlined_call_operand.vmem [shape: f32[1,256], index: 7, kind: input, shape index: {}]   ;;  %s1944_s8 = inlined_call_operand.hbm [shape: f32[8,256], index: 8, kind: output, shape index: {}]  }
   0x1   :  { %s14_s29 = sshll.u32 %s1936_s0, 4  ;;  %s15_s29 = int_to_ptr.hbm [resolvable:$true] %s14_s29 }
   0x2   :  { %17 = dma.hbm_to_smem %s15_s29, 16, %s1479_s30, [#allocation2] }
   0x3   :  { %1469 = dma.done.wait [#allocation2], 16 }
   0x4   :  { %1470 = vsyncadd [#allocation2], 4294967280 }
   0x5   :  { %20 = sfence }
   0x6   :  { %21 = vsyncpa [#allocation5], 0 }
   0x7   :  { %22 = vsyncpa [#allocation8], 0 }
   0x8   :  { %23 = vsyncpa [#allocation11], 0  ;;  %s40_s11 = sshll.u32 %s1938_s2, 4  ;;  %s41_s11 = int_to_ptr.hbm [resolvable:$true] %s40_s11 }
   0x9   :  { %24 = vsyncpa [#allocation6], 0  ;;  %s1480_s12 = smov [#allocation7]   ;;  %s1481_s14 = smov 128  }
   0xa   :  { %s42_s13 = sshll.u32 %s1480_s12, 4  ;;  %s1482_s0 = smov 8   ;;  %s43_s13 = int_to_ptr.vmem [resolvable:$true] %s42_s13 }
   0xb   :  { %48 = dma.hbm_to_vmem [thread:$0]  %s41_s11, 2048, %s43_s13, [#allocation8], %s1481_s14, %s1481_s14, %s1482_s0  }
   0xc   :  { %s66_s17 = sshll.u32 %s1940_s4, 4  ;;  %s1483_s18 = smov [#allocation10]   ;;  %s67_s17 = int_to_ptr.hbm [resolvable:$true] %s66_s17 }
   0xd   :  { %s68_s19 = sshll.u32 %s1483_s18, 4  ;;  %s30_s21 = sshll.u32 %s1937_s1, 4  ;;  %s69_s19 = int_to_ptr.vmem [resolvable:$true] %s68_s19  ;;  %s31_s21 = int_to_ptr.hbm [resolvable:$true] %s30_s21 }
   0xe   :  { %s1484_s22 = smov 64   ;;  %s1485_s23 = smov 4  }
   0xf   :  { %74 = dma.hbm_to_vmem [thread:$0]  %s67_s17, 2048, %s69_s19, [#allocation11], %s1484_s22, %s1484_s22, %s1485_s23  }
  0x10   :  { %s53_s26 = sshll.u32 %s1939_s3, 4  ;;  %s1486_s27 = smov [#allocation4]   ;;  %s54_s26 = int_to_ptr.hbm [resolvable:$true] %s53_s26 }
  0x11   :  { %s32_s28 = sshll.u32 %s1486_s27, 4  ;;  %s1487_s4 = smov [#allocation9]   ;;  %s33_s28 = int_to_ptr.vmem [resolvable:$true] %s32_s28 }
  0x12   :  { %35 = dma.hbm_to_vmem [thread:$0]  %s31_s21, 128, %s33_s28, [#allocation5]  }
  0x13   :  { %s55_s29 = sshll.u32 %s1487_s4, 4  ;;  %s81_s1 = sshll.u32 %s1942_s6, 4  ;;  %s56_s29 = int_to_ptr.vmem [resolvable:$true] %s55_s29  ;;  %s82_s1 = int_to_ptr.hbm [resolvable:$true] %s81_s1 }
  0x14   :  { %61 = dma.hbm_to_vmem [thread:$0]  %s54_s26, 2048, %s56_s29, [#allocation8], %s1484_s22, %s1484_s22, %s1485_s23  }
  0x15   :  { %s1488_s10 = smov [#allocation12]  }
  0x16   :  { %s83_s11 = sshll.u32 %s1488_s10, 4  ;;  %s84_s11 = int_to_ptr.vmem [resolvable:$true] %s83_s11 }
  0x17   :  { %89 = dma.hbm_to_vmem [thread:$0]  %s82_s1, 2048, %s84_s11, [#allocation11], %s1481_s14, %s1481_s14, %s1482_s0  }
  0x18   :  { %1471 = dma.done.wait [#allocation5], 128  }
  0x19   :  { %1472 = vsyncadd [#allocation5], 4294967168 }
  0x1a   :  { %1473 = dma.done.wait [#allocation8], 4096  }
  0x1b   :  { %1474 = vsyncadd [#allocation8], 4294963200 }
  0x1c   :  { %1475 = dma.done.wait [#allocation11], 4096  }
  0x1d   :  { %1476 = vsyncadd [#allocation11], 4294963200  ;;  %v1037_v0 = vld [vmem:[#allocation7 + $0x70] sm:$0xf]  ;;  %v1252_v1 = vld [vmem:[#allocation7 + $0x74] sm:$0xf0] }
  0x1e   :  { %v1251_v2 = vld [vmem:[#allocation7 + $0x74] sm:$0xf]  ;;  %v1559_v3 = vor.u32 %v1252_v1, %v1037_v0  ;;  %v1039_v4 = vld [vmem:[#allocation7 + $0x78] sm:$0xf0]  ;;  %v1029_v5 = vld [vmem:[#allocation7 + $0x60] sm:$0xf] }
  0x1f   :  { %v1250_v6 = vld [vmem:[#allocation7 + $0x64] sm:$0xf0]  ;;  %v1561_v7 = vor.u32 %v1251_v2, %v1039_v4  ;;  %v1249_v8 = vld [vmem:[#allocation7 + $0x64] sm:$0xf]  ;;  %v1031_v9 = vld [vmem:[#allocation7 + $0x68] sm:$0xf0] }
  0x20   :  { %292 = vmatpush.bf16.msra.mxu0 %v1559_v3  ;;  %v1564_v10 = vor.u32 %v1250_v6, %v1029_v5  ;;  %v1567_v11 = vor.u32 %v1249_v8, %v1031_v9  ;;  %v1021_v12 = vld [vmem:[#allocation7 + $0x50] sm:$0xf]  ;;  %v1248_v13 = vld [vmem:[#allocation7 + $0x54] sm:$0xf0]  ;;  %v1247_v14 = vld [vmem:[#allocation7 + $0x54] sm:$0xf] }
  0x21   :  { %305 = vmatpush.bf16.msra.mxu1 %v1561_v7  ;;  %v1023_v15 = vld [vmem:[#allocation7 + $0x58] sm:$0xf0]  ;;  %v1570_v16 = vor.u32 %v1248_v13, %v1021_v12  ;;  %v1013_v18 = vld [vmem:[#allocation7 + $0x40] sm:$0xf]  ;;  %v1246_v19 = vld [vmem:[#allocation7 + $0x44] sm:$0xf0] }
  0x22   :  { %v1573_v17 = vor.u32 %v1247_v14, %v1023_v15  ;;  %v1245_v20 = vld [vmem:[#allocation7 + $0x44] sm:$0xf]  ;;  %v1015_v21 = vld [vmem:[#allocation7 + $0x48] sm:$0xf0]  ;;  %v1576_v22 = vor.u32 %v1246_v19, %v1013_v18  ;;  %v1578_v23 = vld [vmem:[#allocation10 + $0x38] sm:$0xff]  ;;  %s1235_s13 = sld [smem:[#allocation3 + $0x1]] }
  0x23   :  { %1970 = vst [vmem:[#allocation19_spill] sm:$0xff] %v1570_v16  ;;  %v1580_v24 = vld [vmem:[#allocation10 + $0x78] sm:$0xff]  ;;  %v1583_v25 = vor.u32 %v1245_v20, %v1015_v21  ;;  %v1005_v26 = vld [vmem:[#allocation7 + $0x30] sm:$0xf]  ;;  %v1243_v28 = vld [vmem:[#allocation7 + $0x34] sm:$0xf]  ;;  %419 = vmatpush.bf16.msra.mxu2 %v1578_v23 }
  0x24   :  { %293 = vmatpush.bf16.msra.mxu0 %v1564_v10  ;;  %1971 = vst [vmem:[#allocation20_spill] sm:$0xff] %v1573_v17  ;;  %v1244_v27 = vld [vmem:[#allocation7 + $0x34] sm:$0xf0]  ;;  %v1007_v29 = vld [vmem:[#allocation7 + $0x38] sm:$0xf0]  ;;  %432 = vmatpush.bf16.msra.mxu3 %v1580_v24  ;;  %v1587_v30 = vld [vmem:[#allocation10 + $0x30] sm:$0xff] }
  0x25   :  { %306 = vmatpush.bf16.msra.mxu1 %v1567_v11  ;;  %1972 = vst [vmem:[#allocation21_spill] sm:$0xff] %v1576_v22  ;;  %v1589_v31 = vld [vmem:[#allocation10 + $0x70] sm:$0xff]  ;;  %v1592_v32 = vor.u32 %v1244_v27, %v1005_v26  ;;  %v1595_v33 = vor.u32 %v1243_v28, %v1007_v29  ;;  %v997_v34 = vld [vmem:[#allocation7 + $0x20] sm:$0xf]  ;;  %v1242_v35 = vld [vmem:[#allocation7 + $0x24] sm:$0xf0] }
  0x26   :  { %1973 = vst [vmem:[#allocation22_spill] sm:$0xff] %v1583_v25  ;;  %v1241_v36 = vld [vmem:[#allocation7 + $0x24] sm:$0xf]  ;;  %v999_v37 = vld [vmem:[#allocation7 + $0x28] sm:$0xf0]  ;;  %v1604_v40 = vor.u32 %v1242_v35, %v997_v34  ;;  %v1623_v54 = vld [vmem:[#allocation10 + $0x18] sm:$0xff] }
  0x27   :  { %1974 = vst [vmem:[#allocation23_spill] sm:$0xff] %v1592_v32  ;;  %420 = vmatpush.bf16.msra.mxu2 %v1587_v30  ;;  %v1599_v38 = vld [vmem:[#allocation10 + $0x28] sm:$0xff]  ;;  %v1607_v41 = vor.u32 %v1241_v36, %v999_v37  ;;  %v989_v42 = vld [vmem:[#allocation7 + $0x10] sm:$0xf]  ;;  %v1240_v43 = vld [vmem:[#allocation7 + $0x14] sm:$0xf0] }
  0x28   :  { %294 = vmatpush.bf16.msra.mxu0 %v1570_v16  ;;  %1975 = vst [vmem:[#allocation24_spill] sm:$0xff] %v1595_v33  ;;  %433 = vmatpush.bf16.msra.mxu3 %v1589_v31  ;;  %v1601_v39 = vld [vmem:[#allocation10 + $0x68] sm:$0xff]  ;;  %v1239_v44 = vld [vmem:[#allocation7 + $0x14] sm:$0xf]  ;;  %v991_v45 = vld [vmem:[#allocation7 + $0x18] sm:$0xf0]  ;;  %v1616_v48 = vor.u32 %v1240_v43, %v989_v42 }
  0x29   :  { %307 = vmatpush.bf16.msra.mxu1 %v1573_v17  ;;  %1976 = vst [vmem:[#allocation25_spill] sm:$0xff] %v1604_v40  ;;  %v1611_v46 = vld [vmem:[#allocation10 + $0x20] sm:$0xff]  ;;  %v1619_v49 = vor.u32 %v1239_v44, %v991_v45  ;;  %v1238_v51 = vld [vmem:[#allocation7 + $0x4] sm:$0xf0]  ;;  %v983_v53 = vld [vmem:[#allocation7 + $0x8] sm:$0xf0] }
  0x2a   :  { %1977 = vst [vmem:[#allocation26_spill] sm:$0xff] %v1607_v41  ;;  %v1613_v47 = vld [vmem:[#allocation10 + $0x60] sm:$0xff]  ;;  %v1625_v55 = vld [vmem:[#allocation10 + $0x58] sm:$0xff]  ;;  %v1637_v59 = vld [vmem:[#allocation10 + $0x10] sm:$0xff]  ;;  %s1236_s14 = sld [smem:[#allocation3 + $0x2]]  ;;  %s1489_s0 = smov [#allocation13]  }
  0x2b   :  { %421 = vmatpush.bf16.msra.mxu2 %v1599_v38  ;;  %1978 = vst [vmem:[#allocation27_spill] sm:$0xff] %v1616_v48  ;;  %v981_v50 = vld [vmem:[#allocation7] sm:$0xf]  ;;  %v1237_v52 = vld [vmem:[#allocation7 + $0x4] sm:$0xf]  ;;  %v1630_v57 = vld [vmem:[#allocation4] sm:$0xff] }
  0x2c   :  { %295 = vmatpush.bf16.msra.mxu0 %v1576_v22  ;;  %434 = vmatpush.bf16.msra.mxu3 %v1601_v39  ;;  %v1628_v56 = vor.u32 %v1238_v51, %v981_v50  ;;  %v1633_v58 = vor.u32 %v1237_v52, %v983_v53  ;;  %v1639_v60 = vld [vmem:[#allocation10 + $0x50] sm:$0xff]  ;;  %v211_v61 = vpack.c.bf16 %v1630_v57, %v1630_v57  ;;  %v1647_v62 = vld [vmem:[#allocation10 + $0x8] sm:$0xff]  ;;  %v1653_v0 = vld [vmem:[#allocation10] sm:$0xff]  ;;  %s965_s15 = sshll.u32 %s1489_s0, 4  ;;  %s967_s18 = sshll.u32 %s1944_s8, 4  ;;  %s966_s15 = int_to_ptr.vmem [resolvable:$true] %s965_s15  ;;  %s968_s18 = int_to_ptr.hbm [resolvable:$true] %s967_s18 }
  0x2d   :  { %308 = vmatpush.bf16.msra.mxu1 %v1583_v25  ;;  %v1649_v63 = vld [vmem:[#allocation10 + $0x48] sm:$0xff]  ;;  %v1655_v1 = vld [vmem:[#allocation10 + $0x40] sm:$0xff]  ;;  %v1165_v2 = vld [vmem:[#allocation12 + $0x70] sm:$0xf] }
  0x2e   :  { %v1300_v4 = vld [vmem:[#allocation12 + $0x74] sm:$0xf0]  ;;  %v1299_v5 = vld [vmem:[#allocation12 + $0x74] sm:$0xf]  ;;  %v1167_v8 = vld [vmem:[#allocation12 + $0x78] sm:$0xf0] }
  0x2f   :  { %422 = vmatpush.bf16.msra.mxu2 %v1611_v46  ;;  %v1659_v6 = vor.u32 %v1300_v4, %v1165_v2  ;;  %v1157_v9 = vld [vmem:[#allocation12 + $0x60] sm:$0xf]  ;;  %v1298_v12 = vld [vmem:[#allocation12 + $0x64] sm:$0xf0]  ;;  %v1661_v13 = vor.u32 %v1299_v5, %v1167_v8  ;;  %v1297_v14 = vld [vmem:[#allocation12 + $0x64] sm:$0xf] }
  0x30   :  { %296 = vmatpush.bf16.msra.mxu0 %v1592_v32  ;;  %435 = vmatpush.bf16.msra.mxu3 %v1613_v47  ;;  %v1159_v15 = vld [vmem:[#allocation12 + $0x68] sm:$0xf0]  ;;  %v1664_v18 = vor.u32 %v1298_v12, %v1157_v9  ;;  %v1149_v20 = vld [vmem:[#allocation12 + $0x50] sm:$0xf]  ;;  %v1296_v21 = vld [vmem:[#allocation12 + $0x54] sm:$0xf0] }
  0x31   :  { %309 = vmatpush.bf16.msra.mxu1 %v1595_v33  ;;  %v1667_v19 = vor.u32 %v1297_v14, %v1159_v15  ;;  %v1295_v26 = vld [vmem:[#allocation12 + $0x54] sm:$0xf]  ;;  %v1151_v27 = vld [vmem:[#allocation12 + $0x58] sm:$0xf0]  ;;  %v1670_v28 = vor.u32 %v1296_v21, %v1149_v20  ;;  %v1141_v34 = vld [vmem:[#allocation12 + $0x40] sm:$0xf] }
  0x32   :  { %v1673_v29 = vor.u32 %v1295_v26, %v1151_v27  ;;  %v1294_v35 = vld [vmem:[#allocation12 + $0x44] sm:$0xf0]  ;;  %v1293_v36 = vld [vmem:[#allocation12 + $0x44] sm:$0xf]  ;;  %v1143_v37 = vld [vmem:[#allocation12 + $0x48] sm:$0xf0] }
  0x33   :  { %423 = vmatpush.bf16.msra.mxu2 %v1623_v54  ;;  %v1676_v42 = vor.u32 %v1294_v35, %v1141_v34  ;;  %v1679_v43 = vor.u32 %v1293_v36, %v1143_v37  ;;  %v1133_v44 = vld [vmem:[#allocation12 + $0x30] sm:$0xf]  ;;  %v1292_v45 = vld [vmem:[#allocation12 + $0x34] sm:$0xf0]  ;;  %v1291_v50 = vld [vmem:[#allocation12 + $0x34] sm:$0xf] }
  0x34   :  { %297 = vmatpush.bf16.msra.mxu0 %v1604_v40  ;;  %436 = vmatpush.bf16.msra.mxu3 %v1625_v55  ;;  %v1135_v51 = vld [vmem:[#allocation12 + $0x38] sm:$0xf0]  ;;  %v1682_v52 = vor.u32 %v1292_v45, %v1133_v44  ;;  %v1290_v2 = vld [vmem:[#allocation12 + $0x24] sm:$0xf0]  ;;  %v1289_v4 = vld [vmem:[#allocation12 + $0x24] sm:$0xf] }
  0x35   :  { %310 = vmatpush.bf16.msra.mxu1 %v1607_v41  ;;  %v1685_v53 = vor.u32 %v1291_v50, %v1135_v51  ;;  %v1127_v5 = vld [vmem:[#allocation12 + $0x28] sm:$0xf0]  ;;  %v1117_v27 = vld [vmem:[#allocation12 + $0x10] sm:$0xf]  ;;  %v1288_v34 = vld [vmem:[#allocation12 + $0x14] sm:$0xf0] }
  0x36   :  { %1979 = vst [vmem:[#allocation28_spill] sm:$0xff] %v1682_v52  ;;  %v1691_v9 = vor.u32 %v1289_v4, %v1127_v5  ;;  %v1287_v35 = vld [vmem:[#allocation12 + $0x14] sm:$0xf]  ;;  %v1703_v36 = vor.u32 %v1288_v34, %v1117_v27  ;;  %v1119_v37 = vld [vmem:[#allocation12 + $0x18] sm:$0xf0]  ;;  %v1733_v27 = vld [vmem:[#allocation9 + $0x68] sm:$0xff] }
  0x37   :  { %424 = vmatpush.bf16.msra.mxu2 %v1637_v59  ;;  %1980 = vst [vmem:[#allocation29_spill] sm:$0xff] %v1685_v53  ;;  %v1705_v44 = vor.u32 %v1287_v35, %v1119_v37  ;;  %v1109_v45 = vld [vmem:[#allocation12] sm:$0xf]  ;;  %v1286_v50 = vld [vmem:[#allocation12 + $0x4] sm:$0xf0]  ;;  %v1716_v5 = vld [vmem:[#allocation9 + $0x38] sm:$0xff] }
  0x38   :  { %298 = vmatpush.bf16.msra.mxu0 %v1616_v48  ;;  %437 = vmatpush.bf16.msra.mxu3 %v1639_v60  ;;  %1982 = vst [vmem:[#allocation31_spill] sm:$0xff] %v1691_v9  ;;  %v1285_v51 = vld [vmem:[#allocation12 + $0x4] sm:$0xf]  ;;  %v1747_v37 = vld [vmem:[#allocation9 + $0x18] sm:$0xff] }
  0x39   :  { %311 = vmatpush.bf16.msra.mxu1 %v1619_v49  ;;  %1983 = vst [vmem:[#allocation32_spill] sm:$0xff] %v1703_v36  ;;  %v1739_v34 = vld [vmem:[#allocation9 + $0x20] sm:$0xff] }
  0x3a   :  { %1984 = vst [vmem:[#allocation33_spill] sm:$0xff] %v1705_v44  ;;  %v1741_v35 = vld [vmem:[#allocation9 + $0x60] sm:$0xff] }
  0x3b   :  { %425 = vmatpush.bf16.msra.mxu2 %v1647_v62 }
  0x3c   :  { %299 = vmatpush.bf16.msra.mxu0 %v1628_v56  ;;  %438 = vmatpush.bf16.msra.mxu3 %v1649_v63 }
  0x3d   :  { %312 = vmatpush.bf16.msra.mxu1 %v1633_v58 }
  0x3f   :  { %300 = vmatmul.bf16.vlgmr.msra.gmra.mxu0 %v211_v61  ;;  %426 = vmatpush.bf16.msra.mxu2 %v1653_v0 }
  0x40   :  { %313 = vmatmul.bf16.vlgmr.msra.gmra.mxu1 %v211_v61  ;;  %439 = vmatpush.bf16.msra.mxu3 %v1655_v1  ;;  %v1125_v61 = vld [vmem:[#allocation12 + $0x20] sm:$0xf] }
  0x41   :  { %532 = vmatpush.bf16.msrb.mxu0 %v1659_v6  ;;  %545 = vmatpush.bf16.msrb.mxu1 %v1661_v13  ;;  %v1688_v8 = vor.u32 %v1290_v2, %v1125_v61  ;;  %v1709_v61 = vor.u32 %v1286_v50, %v1109_v45  ;;  %v1111_v2 = vld [vmem:[#allocation12 + $0x8] sm:$0xf0]  ;;  %v1749_v45 = vld [vmem:[#allocation9 + $0x58] sm:$0xff]  ;;  %v1755_v50 = vld [vmem:[#allocation9 + $0x10] sm:$0xff] }
  0x42   :  { %v1711_v4 = vor.u32 %v1285_v51, %v1111_v2  ;;  %v1757_v51 = vld [vmem:[#allocation9 + $0x50] sm:$0xff]  ;;  %v1763_v2 = vld [vmem:[%s1941_s5] ss:$0 sm:$0xff] }
  0x43   :  { %1981 = vst [vmem:[#allocation30_spill] sm:$0xff] %v1688_v8  ;;  %658 = vmatpush.bf16.msrb.mxu2 %v1716_v5 }
  0x44   :  { %1985 = vst [vmem:[#allocation34_spill] sm:$0xff] %v1709_v61 }
  0x45   :  { %533 = vmatpush.bf16.msrb.mxu0 %v1664_v18  ;;  %546 = vmatpush.bf16.msrb.mxu1 %v1667_v19  ;;  %1986 = vst [vmem:[#allocation35_spill] sm:$0xff] %v1711_v4 }
  0x49   :  { %534 = vmatpush.bf16.msrb.mxu0 %v1670_v28  ;;  %547 = vmatpush.bf16.msrb.mxu1 %v1673_v29 }
  0x4d   :  { %535 = vmatpush.bf16.msrb.mxu0 %v1676_v42  ;;  %548 = vmatpush.bf16.msrb.mxu1 %v1679_v43 }
  0x51   :  { %536 = vmatpush.bf16.msrb.mxu0 %v1682_v52  ;;  %549 = vmatpush.bf16.msrb.mxu1 %v1685_v53 }
  0x55   :  { %537 = vmatpush.bf16.msrb.mxu0 %v1688_v8  ;;  %550 = vmatpush.bf16.msrb.mxu1 %v1691_v9 }
  0x59   :  { %538 = vmatpush.bf16.msrb.mxu0 %v1703_v36  ;;  %551 = vmatpush.bf16.msrb.mxu1 %v1705_v44 }
  0x5d   :  { %539 = vmatpush.bf16.msrb.mxu0 %v1709_v61  ;;  %552 = vmatpush.bf16.msrb.mxu1 %v1711_v4 }
  0x61   :  { %686 = vmatpush.bf16.msra.mxu0 %v1559_v3  ;;  %699 = vmatpush.bf16.msra.mxu1 %v1561_v7 }
  0x65   :  { %687 = vmatpush.bf16.msra.mxu0 %v1564_v10  ;;  %700 = vmatpush.bf16.msra.mxu1 %v1567_v11 }
  0x69   :  { %688 = vmatpush.bf16.msra.mxu0 %v1570_v16  ;;  %701 = vmatpush.bf16.msra.mxu1 %v1573_v17 }
  0x6d   :  { %689 = vmatpush.bf16.msra.mxu0 %v1576_v22  ;;  %702 = vmatpush.bf16.msra.mxu1 %v1583_v25 }
  0x71   :  { %690 = vmatpush.bf16.msra.mxu0 %v1592_v32  ;;  %703 = vmatpush.bf16.msra.mxu1 %v1595_v33 }
  0x75   :  { %691 = vmatpush.bf16.msra.mxu0 %v1604_v40  ;;  %704 = vmatpush.bf16.msra.mxu1 %v1607_v41 }
  0x79   :  { %692 = vmatpush.bf16.msra.mxu0 %v1616_v48  ;;  %705 = vmatpush.bf16.msra.mxu1 %v1619_v49 }
  0x7d   :  { %693 = vmatpush.bf16.msra.mxu0 %v1628_v56  ;;  %706 = vmatpush.bf16.msra.mxu1 %v1633_v58 }
  0xbc   :  { %v1693_v12 = vpop.f32.mrf.mxu0 }
  0xbd   :  { %v1696_v14 = vpop.f32.mrf.mxu1  ;;  %v318_v15 = vpack.c.bf16 %v1693_v12, %v1693_v12 }
  0xbe   :  { %v319_v20 = vpack.c.bf16 %v1696_v14, %v1696_v14 }
  0xbf   :  { %427 = vmatmul.bf16.vlgmr.msra.gmra.mxu2 %v318_v15  ;;  %v1718_v15 = vld [vmem:[#allocation9 + $0x78] sm:$0xff] }
  0xc0   :  { %440 = vmatmul.bf16.vlgmr.msra.gmra.mxu3 %v319_v20  ;;  %v1723_v20 = vld [vmem:[#allocation9 + $0x30] sm:$0xff] }
  0xc1   :  { %671 = vmatpush.bf16.msrb.mxu3 %v1718_v15  ;;  %659 = vmatpush.bf16.msrb.mxu2 %v1723_v20 }
  0xc4   :  { %v303_v21 = vpop.f32.mrf.mxu0 }
  0xc5   :  { %v316_v26 = vpop.f32.mrf.mxu1  ;;  %v1725_v21 = vld [vmem:[#allocation9 + $0x70] sm:$0xff] }
  0xc6   :  { %672 = vmatpush.bf16.msrb.mxu3 %v1725_v21  ;;  %v1731_v26 = vld [vmem:[#allocation9 + $0x28] sm:$0xff] }
  0xc7   :  { %660 = vmatpush.bf16.msrb.mxu2 %v1731_v26 }
  0xca   :  { %673 = vmatpush.bf16.msrb.mxu3 %v1733_v27 }
  0xcb   :  { %661 = vmatpush.bf16.msrb.mxu2 %v1739_v34 }
  0xce   :  { %674 = vmatpush.bf16.msrb.mxu3 %v1741_v35 }
  0xcf   :  { %662 = vmatpush.bf16.msrb.mxu2 %v1747_v37 }
  0xd2   :  { %675 = vmatpush.bf16.msrb.mxu3 %v1749_v45 }
  0xd3   :  { %663 = vmatpush.bf16.msrb.mxu2 %v1755_v50 }
  0xd6   :  { %676 = vmatpush.bf16.msrb.mxu3 %v1757_v51 }
 0x142   :  { %v428_v33 = vpop.f32.mrf.mxu2 }
 0x143   :  { %v429_v32 = vadd.f32 %v1763_v2, %v428_v33  ;;  %v441_v25 = vpop.f32.mrf.mxu3 }
 0x145   :  { %v442_v40 = vadd.f32 %v441_v25, %v429_v32  ;;  %v1797_v25 = vld [vmem:[#allocation9 + $0x40] sm:$0xff]  ;;  %v209_v32 = vld [vmem:[%s1943_s7] sm:$0x3]  ;;  %s712_s7 = sld [smem:[#allocation3]] }
 0x146   :  { %v1816_v33 = vperm.slane %v209_v32, 0 }
 0x147   :  { %v445_v22 = vmax.f32 %v442_v40, 0.0  ;;  %v1818_v40 = vperm.slane %v209_v32, 1 }
 0x149   :  { %v446_v17 = vpack.c.bf16 %v445_v22, %v445_v22  ;;  %v1795_v22 = vld [vmem:[#allocation9] sm:$0xff] }
 0x14a   :  { %v430_v41 = vpop.f32.mrf.mxu2 }
 0x14b   :  { %v443_v16 = vpop.f32.mrf.mxu3  ;;  %540 = vmatmul.bf16.vlgmr.msrb.gmra.mxu0 %v446_v17  ;;  %553 = vmatmul.bf16.vlgmr.msrb.gmra.mxu1 %v446_v17  ;;  %v1791_v17 = vld [vmem:[#allocation9 + $0x48] sm:$0xff] }
 0x14c   :  { %748 = vmatpush.bf16.msrb.mxu0 %v1659_v6  ;;  %761 = vmatpush.bf16.msrb.mxu1 %v1661_v13  ;;  %v1789_v16 = vld [vmem:[#allocation9 + $0x8] sm:$0xff] }
 0x14d   :  { %664 = vmatpush.bf16.msrb.mxu2 %v1789_v16  ;;  %677 = vmatpush.bf16.msrb.mxu3 %v1791_v17 }
 0x150   :  { %749 = vmatpush.bf16.msrb.mxu0 %v1664_v18  ;;  %762 = vmatpush.bf16.msrb.mxu1 %v1667_v19 }
 0x151   :  { %665 = vmatpush.bf16.msrb.mxu2 %v1795_v22  ;;  %678 = vmatpush.bf16.msrb.mxu3 %v1797_v25 }
 0x154   :  { %750 = vmatpush.bf16.msrb.mxu0 %v1670_v28  ;;  %763 = vmatpush.bf16.msrb.mxu1 %v1673_v29 }
 0x155   :  { %720 = vmatpush.bf16.msra.mxu2 %v1578_v23  ;;  %733 = vmatpush.bf16.msra.mxu3 %v1580_v24 }
 0x158   :  { %751 = vmatpush.bf16.msrb.mxu0 %v1676_v42  ;;  %764 = vmatpush.bf16.msrb.mxu1 %v1679_v43 }
 0x159   :  { %721 = vmatpush.bf16.msra.mxu2 %v1587_v30  ;;  %734 = vmatpush.bf16.msra.mxu3 %v1589_v31 }
 0x15c   :  { %752 = vmatpush.bf16.msrb.mxu0 %v1682_v52  ;;  %765 = vmatpush.bf16.msrb.mxu1 %v1685_v53 }
 0x15d   :  { %722 = vmatpush.bf16.msra.mxu2 %v1599_v38  ;;  %735 = vmatpush.bf16.msra.mxu3 %v1601_v39 }
 0x160   :  { %753 = vmatpush.bf16.msrb.mxu0 %v1688_v8  ;;  %766 = vmatpush.bf16.msrb.mxu1 %v1691_v9 }
 0x161   :  { %723 = vmatpush.bf16.msra.mxu2 %v1611_v46  ;;  %736 = vmatpush.bf16.msra.mxu3 %v1613_v47 }
 0x164   :  { %754 = vmatpush.bf16.msrb.mxu0 %v1703_v36  ;;  %767 = vmatpush.bf16.msrb.mxu1 %v1705_v44 }
 0x165   :  { %724 = vmatpush.bf16.msra.mxu2 %v1623_v54  ;;  %737 = vmatpush.bf16.msra.mxu3 %v1625_v55 }
 0x168   :  { %755 = vmatpush.bf16.msrb.mxu0 %v1709_v61  ;;  %768 = vmatpush.bf16.msrb.mxu1 %v1711_v4 }
 0x169   :  { %725 = vmatpush.bf16.msra.mxu2 %v1637_v59  ;;  %738 = vmatpush.bf16.msra.mxu3 %v1639_v60 }
 0x16d   :  { %726 = vmatpush.bf16.msra.mxu2 %v1647_v62  ;;  %739 = vmatpush.bf16.msra.mxu3 %v1649_v63 }
 0x171   :  { %727 = vmatpush.bf16.msra.mxu2 %v1653_v0  ;;  %740 = vmatpush.bf16.msra.mxu3 %v1655_v1 }
 0x1c8   :  { %v541_v41 = vpop.f32.mrf.mxu0  ;;  %v554_v4 = vpop.f32.mrf.mxu1 }
 0x1c9   :  { %v542_v61 = vadd.f32 %v541_v41, %v1816_v33  ;;  %v555_v44 = vadd.f32 %v554_v4, %v1818_v40  ;;  %v1987_v4 = vld [vmem:[#allocation19_spill] sm:$0xff]  ;;  %v1988_v41 = vld [vmem:[#allocation20_spill] sm:$0xff] }
 0x1cb   :  { %v558_v36 = vadd.f32 %v542_v61, %v1693_v12  ;;  %v559_v9 = vadd.f32 %v555_v44, %v1696_v14 }
 0x1cd   :  { %v560_v32 = vpack.c.bf16 %v558_v36, %v558_v36  ;;  %v561_v8 = vpack.c.bf16 %v559_v9, %v559_v9 }
 0x1cf   :  { %666 = vmatmul.bf16.vlgmr.msrb.gmra.mxu2 %v560_v32  ;;  %679 = vmatmul.bf16.vlgmr.msrb.gmra.mxu3 %v561_v8  ;;  %v1989_v32 = vld [vmem:[#allocation21_spill] sm:$0xff] }
 0x1d0   :  { %v543_v53 = vpop.f32.mrf.mxu0  ;;  %v556_v52 = vpop.f32.mrf.mxu1  ;;  %778 = vmatpush.bf16.msrb.mxu2 %v1716_v5  ;;  %791 = vmatpush.bf16.msrb.mxu3 %v1718_v15 }
 0x1d4   :  { %779 = vmatpush.bf16.msrb.mxu2 %v1723_v20  ;;  %792 = vmatpush.bf16.msrb.mxu3 %v1725_v21 }
 0x1d8   :  { %780 = vmatpush.bf16.msrb.mxu2 %v1731_v26  ;;  %793 = vmatpush.bf16.msrb.mxu3 %v1733_v27 }
 0x1dc   :  { %781 = vmatpush.bf16.msrb.mxu2 %v1739_v34  ;;  %794 = vmatpush.bf16.msrb.mxu3 %v1741_v35 }
 0x1e0   :  { %782 = vmatpush.bf16.msrb.mxu2 %v1747_v37  ;;  %795 = vmatpush.bf16.msrb.mxu3 %v1749_v45 }
 0x1e4   :  { %783 = vmatpush.bf16.msrb.mxu2 %v1755_v50  ;;  %796 = vmatpush.bf16.msrb.mxu3 %v1757_v51 }
 0x1e8   :  { %784 = vmatpush.bf16.msrb.mxu2 %v1789_v16  ;;  %797 = vmatpush.bf16.msrb.mxu3 %v1791_v17 }
 0x1ec   :  { %785 = vmatpush.bf16.msrb.mxu2 %v1795_v22  ;;  %798 = vmatpush.bf16.msrb.mxu3 %v1797_v25 }
 0x252   :  { %v667_v52 = vpop.f32.mrf.mxu2  ;;  %v680_v53 = vpop.f32.mrf.mxu3 }
 0x253   :  { %v681_v8 = vadd.f32 %v680_v53, %v667_v52  ;;  %v1990_v52 = vld [vmem:[#allocation22_spill] sm:$0xff]  ;;  %v1991_v53 = vld [vmem:[#allocation23_spill] sm:$0xff] }
 0x255   :  { %v684_v12 = vsub.f32 %v681_v8, %v1630_v57  ;;  %v1992_v8 = vld [vmem:[#allocation24_spill] sm:$0xff] }
 0x257   :  { %v685_v14 = vpack.c.bf16 %v684_v12, %v684_v12  ;;  %v1993_v12 = vld [vmem:[#allocation25_spill] sm:$0xff] }
 0x259   :  { %694 = vmatmul.bf16.vlgmr.msra.gmra.mxu0 %v685_v14  ;;  %707 = vmatmul.bf16.vlgmr.msra.gmra.mxu1 %v685_v14  ;;  %v1994_v14 = vld [vmem:[#allocation26_spill] sm:$0xff] }
 0x25a   :  { %v669_v44 = vpop.f32.mrf.mxu2  ;;  %v682_v61 = vpop.f32.mrf.mxu3  ;;  %806 = vmatpush.bf16.msra.mxu0 %v1559_v3  ;;  %819 = vmatpush.bf16.msra.mxu1 %v1561_v7 }
 0x25b   :  { %v713_v44 = vstv %s712_s7 }
 0x25e   :  { %807 = vmatpush.bf16.msra.mxu0 %v1564_v10  ;;  %820 = vmatpush.bf16.msra.mxu1 %v1567_v11 }
 0x262   :  { %808 = vmatpush.bf16.msra.mxu0 %v1987_v4  ;;  %821 = vmatpush.bf16.msra.mxu1 %v1988_v41 }
 0x266   :  { %809 = vmatpush.bf16.msra.mxu0 %v1989_v32  ;;  %822 = vmatpush.bf16.msra.mxu1 %v1990_v52 }
 0x26a   :  { %810 = vmatpush.bf16.msra.mxu0 %v1991_v53  ;;  %823 = vmatpush.bf16.msra.mxu1 %v1992_v8 }
 0x26e   :  { %811 = vmatpush.bf16.msra.mxu0 %v1993_v12  ;;  %824 = vmatpush.bf16.msra.mxu1 %v1994_v14 }
 0x272   :  { %812 = vmatpush.bf16.msra.mxu0 %v1616_v48  ;;  %825 = vmatpush.bf16.msra.mxu1 %v1619_v49 }
 0x276   :  { %813 = vmatpush.bf16.msra.mxu0 %v1628_v56  ;;  %826 = vmatpush.bf16.msra.mxu1 %v1633_v58 }
 0x2d6   :  { %v695_v61 = vpop.f32.mrf.mxu0  ;;  %v708_v52 = vpop.f32.mrf.mxu1 }
 0x2d7   :  { %v714_v32 = vmul.f32 %v713_v44, %v695_v61  ;;  %v715_v53 = vmul.f32 %v713_v44, %v708_v52 }
 0x2d9   :  { %v716_v41 = vsub.f32 %v558_v36, %v714_v32  ;;  %v717_v8 = vsub.f32 %v559_v9, %v715_v53 }
 0x2db   :  { %v718_v4 = vpack.c.bf16 %v716_v41, %v716_v41  ;;  %v719_v12 = vpack.c.bf16 %v717_v8, %v717_v8 }
 0x2dd   :  { %728 = vmatmul.bf16.vlgmr.msra.gmra.mxu2 %v718_v4  ;;  %741 = vmatmul.bf16.vlgmr.msra.gmra.mxu3 %v719_v12 }
 0x2de   :  { %v697_v14 = vpop.f32.mrf.mxu0  ;;  %v710_v48 = vpop.f32.mrf.mxu1  ;;  %840 = vmatpush.bf16.msra.mxu2 %v1578_v23  ;;  %853 = vmatpush.bf16.msra.mxu3 %v1580_v24 }
 0x2df   :  { %v1995_v48 = vld [vmem:[#allocation28_spill] sm:$0xff] }
 0x2e2   :  { %841 = vmatpush.bf16.msra.mxu2 %v1587_v30  ;;  %854 = vmatpush.bf16.msra.mxu3 %v1589_v31 }
 0x2e6   :  { %842 = vmatpush.bf16.msra.mxu2 %v1599_v38  ;;  %855 = vmatpush.bf16.msra.mxu3 %v1601_v39 }
 0x2ea   :  { %843 = vmatpush.bf16.msra.mxu2 %v1611_v46  ;;  %856 = vmatpush.bf16.msra.mxu3 %v1613_v47 }
 0x2ee   :  { %844 = vmatpush.bf16.msra.mxu2 %v1623_v54  ;;  %857 = vmatpush.bf16.msra.mxu3 %v1625_v55  ;;  %v1996_v54 = vld [vmem:[#allocation29_spill] sm:$0xff]  ;;  %v1997_v55 = vld [vmem:[#allocation30_spill] sm:$0xff] }
 0x2f2   :  { %845 = vmatpush.bf16.msra.mxu2 %v1637_v59  ;;  %858 = vmatpush.bf16.msra.mxu3 %v1639_v60  ;;  %v1998_v59 = vld [vmem:[#allocation31_spill] sm:$0xff]  ;;  %v1999_v60 = vld [vmem:[#allocation32_spill] sm:$0xff] }
 0x2f6   :  { %846 = vmatpush.bf16.msra.mxu2 %v1647_v62  ;;  %859 = vmatpush.bf16.msra.mxu3 %v1649_v63  ;;  %v2000_v62 = vld [vmem:[#allocation33_spill] sm:$0xff]  ;;  %v2001_v63 = vld [vmem:[#allocation34_spill] sm:$0xff] }
 0x2fa   :  { %847 = vmatpush.bf16.msra.mxu2 %v1653_v0  ;;  %860 = vmatpush.bf16.msra.mxu3 %v1655_v1  ;;  %v2002_v0 = vld [vmem:[#allocation35_spill] sm:$0xff] }
 0x360   :  { %v729_v23 = vpop.f32.mrf.mxu2  ;;  %v742_v24 = vpop.f32.mrf.mxu3 }
 0x361   :  { %v730_v30 = vadd.f32 %v1763_v2, %v729_v23 }
 0x363   :  { %v743_v31 = vadd.f32 %v742_v24, %v730_v30 }
 0x365   :  { %v746_v38 = vmax.f32 %v743_v31, 0.0 }
 0x367   :  { %v747_v39 = vpack.c.bf16 %v746_v38, %v746_v38 }
 0x368   :  { %v731_v46 = vpop.f32.mrf.mxu2  ;;  %v744_v47 = vpop.f32.mrf.mxu3 }
 0x369   :  { %756 = vmatmul.bf16.vlgmr.msrb.gmra.mxu0 %v747_v39  ;;  %769 = vmatmul.bf16.vlgmr.msrb.gmra.mxu1 %v747_v39 }
 0x36a   :  { %868 = vmatpush.bf16.msrb.mxu0 %v1659_v6  ;;  %881 = vmatpush.bf16.msrb.mxu1 %v1661_v13 }
 0x36e   :  { %869 = vmatpush.bf16.msrb.mxu0 %v1664_v18  ;;  %882 = vmatpush.bf16.msrb.mxu1 %v1667_v19 }
 0x372   :  { %870 = vmatpush.bf16.msrb.mxu0 %v1670_v28  ;;  %883 = vmatpush.bf16.msrb.mxu1 %v1673_v29 }
 0x376   :  { %871 = vmatpush.bf16.msrb.mxu0 %v1676_v42  ;;  %884 = vmatpush.bf16.msrb.mxu1 %v1679_v43 }
 0x37a   :  { %872 = vmatpush.bf16.msrb.mxu0 %v1995_v48  ;;  %885 = vmatpush.bf16.msrb.mxu1 %v1996_v54 }
 0x37e   :  { %873 = vmatpush.bf16.msrb.mxu0 %v1997_v55  ;;  %886 = vmatpush.bf16.msrb.mxu1 %v1998_v59 }
 0x382   :  { %874 = vmatpush.bf16.msrb.mxu0 %v1999_v60  ;;  %887 = vmatpush.bf16.msrb.mxu1 %v2000_v62 }
 0x386   :  { %875 = vmatpush.bf16.msrb.mxu0 %v2001_v63  ;;  %888 = vmatpush.bf16.msrb.mxu1 %v2002_v0 }
 0x3e6   :  { %v757_v1 = vpop.f32.mrf.mxu0  ;;  %v770_v6 = vpop.f32.mrf.mxu1 }
 0x3e7   :  { %v758_v13 = vadd.f32 %v757_v1, %v1816_v33  ;;  %v771_v18 = vadd.f32 %v770_v6, %v1818_v40 }
 0x3e9   :  { %v774_v19 = vadd.f32 %v758_v13, %v716_v41  ;;  %v775_v28 = vadd.f32 %v771_v18, %v717_v8 }
 0x3eb   :  { %v776_v29 = vpack.c.bf16 %v774_v19, %v774_v19  ;;  %v777_v42 = vpack.c.bf16 %v775_v28, %v775_v28 }
 0x3ed   :  { %786 = vmatmul.bf16.vlgmr.msrb.gmra.mxu2 %v776_v29  ;;  %799 = vmatmul.bf16.vlgmr.msrb.gmra.mxu3 %v777_v42 }
 0x3ee   :  { %v759_v43 = vpop.f32.mrf.mxu0  ;;  %v772_v9 = vpop.f32.mrf.mxu1  ;;  %898 = vmatpush.bf16.msrb.mxu2 %v1716_v5  ;;  %911 = vmatpush.bf16.msrb.mxu3 %v1718_v15 }
 0x3f2   :  { %899 = vmatpush.bf16.msrb.mxu2 %v1723_v20  ;;  %912 = vmatpush.bf16.msrb.mxu3 %v1725_v21 }
 0x3f6   :  { %900 = vmatpush.bf16.msrb.mxu2 %v1731_v26  ;;  %913 = vmatpush.bf16.msrb.mxu3 %v1733_v27 }
 0x3fa   :  { %901 = vmatpush.bf16.msrb.mxu2 %v1739_v34  ;;  %914 = vmatpush.bf16.msrb.mxu3 %v1741_v35  ;;  %v2003_v34 = vld [vmem:[#allocation19_spill] sm:$0xff]  ;;  %v2004_v35 = vld [vmem:[#allocation20_spill] sm:$0xff] }
 0x3fe   :  { %902 = vmatpush.bf16.msrb.mxu2 %v1747_v37  ;;  %915 = vmatpush.bf16.msrb.mxu3 %v1749_v45  ;;  %v2005_v37 = vld [vmem:[#allocation21_spill] sm:$0xff]  ;;  %v2006_v45 = vld [vmem:[#allocation22_spill] sm:$0xff] }
 0x402   :  { %903 = vmatpush.bf16.msrb.mxu2 %v1755_v50  ;;  %916 = vmatpush.bf16.msrb.mxu3 %v1757_v51  ;;  %v2007_v50 = vld [vmem:[#allocation23_spill] sm:$0xff]  ;;  %v2008_v51 = vld [vmem:[#allocation24_spill] sm:$0xff] }
 0x406   :  { %904 = vmatpush.bf16.msrb.mxu2 %v1789_v16  ;;  %917 = vmatpush.bf16.msrb.mxu3 %v1791_v17  ;;  %v2009_v16 = vld [vmem:[#allocation25_spill] sm:$0xff] }
 0x40a   :  { %905 = vmatpush.bf16.msrb.mxu2 %v1795_v22  ;;  %918 = vmatpush.bf16.msrb.mxu3 %v1797_v25 }
 0x470   :  { %v787_v36 = vpop.f32.mrf.mxu2  ;;  %v800_v5 = vpop.f32.mrf.mxu3 }
 0x471   :  { %v801_v15 = vadd.f32 %v800_v5, %v787_v36 }
 0x473   :  { %v804_v20 = vsub.f32 %v801_v15, %v1630_v57 }
 0x475   :  { %v805_v21 = vpack.c.bf16 %v804_v20, %v804_v20 }
 0x477   :  { %814 = vmatmul.bf16.vlgmr.msra.gmra.mxu0 %v805_v21  ;;  %827 = vmatmul.bf16.vlgmr.msra.gmra.mxu1 %v805_v21 }
 0x478   :  { %v789_v26 = vpop.f32.mrf.mxu2  ;;  %v802_v27 = vpop.f32.mrf.mxu3  ;;  %926 = vmatpush.bf16.msra.mxu0 %v1559_v3  ;;  %939 = vmatpush.bf16.msra.mxu1 %v1561_v7  ;;  %v2010_v3 = vld [vmem:[#allocation26_spill] sm:$0xff]  ;;  %v2011_v7 = vld [vmem:[#allocation27_spill] sm:$0xff] }
 0x47c   :  { %927 = vmatpush.bf16.msra.mxu0 %v1564_v10  ;;  %940 = vmatpush.bf16.msra.mxu1 %v1567_v11  ;;  %v833_v10 = vstv %s1235_s13 }
 0x480   :  { %928 = vmatpush.bf16.msra.mxu0 %v2003_v34  ;;  %941 = vmatpush.bf16.msra.mxu1 %v2004_v35 }
 0x484   :  { %929 = vmatpush.bf16.msra.mxu0 %v2005_v37  ;;  %942 = vmatpush.bf16.msra.mxu1 %v2006_v45 }
 0x488   :  { %930 = vmatpush.bf16.msra.mxu0 %v2007_v50  ;;  %943 = vmatpush.bf16.msra.mxu1 %v2008_v51 }
 0x48c   :  { %931 = vmatpush.bf16.msra.mxu0 %v2009_v16  ;;  %944 = vmatpush.bf16.msra.mxu1 %v2010_v3 }
 0x490   :  { %932 = vmatpush.bf16.msra.mxu0 %v2011_v7  ;;  %945 = vmatpush.bf16.msra.mxu1 %v1619_v49 }
 0x494   :  { %933 = vmatpush.bf16.msra.mxu0 %v1628_v56  ;;  %946 = vmatpush.bf16.msra.mxu1 %v1633_v58 }
 0x4f4   :  { %v815_v11 = vpop.f32.mrf.mxu0  ;;  %v828_v17 = vpop.f32.mrf.mxu1 }
 0x4f5   :  { %v834_v22 = vmul.f32 %v833_v10, %v815_v11  ;;  %v835_v25 = vmul.f32 %v833_v10, %v828_v17 }
 0x4f7   :  { %v836_v4 = vsub.f32 %v774_v19, %v834_v22  ;;  %v837_v41 = vsub.f32 %v775_v28, %v835_v25 }
 0x4f9   :  { %v838_v32 = vpack.c.bf16 %v836_v4, %v836_v4  ;;  %v839_v52 = vpack.c.bf16 %v837_v41, %v837_v41 }
 0x4fb   :  { %848 = vmatmul.bf16.vlgmr.msra.gmra.mxu2 %v838_v32  ;;  %861 = vmatmul.bf16.vlgmr.msra.gmra.mxu3 %v839_v52 }
 0x4fc   :  { %v817_v53 = vpop.f32.mrf.mxu0  ;;  %v830_v8 = vpop.f32.mrf.mxu1 }
 0x57e   :  { %v849_v12 = vpop.f32.mrf.mxu2  ;;  %v862_v49 = vpop.f32.mrf.mxu3 }
 0x57f   :  { %v850_v56 = vadd.f32 %v1763_v2, %v849_v12 }
 0x581   :  { %v863_v14 = vadd.f32 %v862_v49, %v850_v56 }
 0x583   :  { %v866_v58 = vmax.f32 %v863_v14, 0.0 }
 0x585   :  { %v867_v44 = vpack.c.bf16 %v866_v58, %v866_v58 }
 0x586   :  { %v851_v61 = vpop.f32.mrf.mxu2  ;;  %v864_v23 = vpop.f32.mrf.mxu3 }
 0x587   :  { %876 = vmatmul.bf16.vlgmr.msrb.gmra.mxu0 %v867_v44  ;;  %889 = vmatmul.bf16.vlgmr.msrb.gmra.mxu1 %v867_v44 }
 0x604   :  { %v877_v24 = vpop.f32.mrf.mxu0  ;;  %v890_v30 = vpop.f32.mrf.mxu1 }
 0x605   :  { %v878_v31 = vadd.f32 %v877_v24, %v1816_v33  ;;  %v891_v38 = vadd.f32 %v890_v30, %v1818_v40  ;;  %v953_v40 = vstv %s1236_s14 }
 0x607   :  { %v894_v39 = vadd.f32 %v878_v31, %v836_v4  ;;  %v895_v46 = vadd.f32 %v891_v38, %v837_v41 }
 0x609   :  { %v896_v47 = vpack.c.bf16 %v894_v39, %v894_v39  ;;  %v897_v48 = vpack.c.bf16 %v895_v46, %v895_v46 }
 0x60b   :  { %906 = vmatmul.bf16.vlgmr.msrb.gmra.mxu2 %v896_v47  ;;  %919 = vmatmul.bf16.vlgmr.msrb.gmra.mxu3 %v897_v48 }
 0x60c   :  { %v879_v2 = vpop.f32.mrf.mxu0  ;;  %v892_v54 = vpop.f32.mrf.mxu1 }
 0x68e   :  { %v907_v55 = vpop.f32.mrf.mxu2  ;;  %v920_v59 = vpop.f32.mrf.mxu3 }
 0x68f   :  { %v921_v60 = vadd.f32 %v920_v59, %v907_v55 }
 0x691   :  { %v924_v62 = vsub.f32 %v921_v60, %v1630_v57 }
 0x693   :  { %v925_v63 = vpack.c.bf16 %v924_v62, %v924_v62 }
 0x695   :  { %934 = vmatmul.bf16.vlgmr.msra.gmra.mxu0 %v925_v63  ;;  %947 = vmatmul.bf16.vlgmr.msra.gmra.mxu1 %v925_v63 }
 0x696   :  { %v909_v0 = vpop.f32.mrf.mxu2  ;;  %v922_v33 = vpop.f32.mrf.mxu3 }
 0x712   :  { %v935_v1 = vpop.f32.mrf.mxu0  ;;  %v948_v6 = vpop.f32.mrf.mxu1 }
 0x713   :  { %v954_v13 = vmul.f32 %v953_v40, %v935_v1  ;;  %v955_v18 = vmul.f32 %v953_v40, %v948_v6 }
 0x715   :  { %v956_v19 = vsub.f32 %v894_v39, %v954_v13  ;;  %v957_v28 = vsub.f32 %v895_v46, %v955_v18 }
 0x717   :  { %958 = vst [vmem:[#allocation13] sm:$0xff] %v956_v19 }
 0x718   :  { %959 = vst [vmem:[#allocation13 + $0x8] sm:$0xff] %v957_v28 }
 0x719   :  { %970 = dma.vmem_to_hbm [thread:$0]  %s966_s15, 256, %s968_s18, [#allocation6]  }
 0x71a   :  { %v937_v57 = vpop.f32.mrf.mxu0  ;;  %v950_v29 = vpop.f32.mrf.mxu1 }
 0x71b   :  { %1477 = dma.done.wait [#allocation6], 256  }
 0x71c   :  { %1478 = vsyncadd [#allocation6], 4294967040 }
 0x71d   :  { %975 = vsyncpa [#allocation5], 1 }
 0x71e   :  { %976 = vsyncpa [#allocation8], 1 }
 0x71f   :  { %977 = vsyncpa [#allocation11], 1 }
 0x720   :  { %978 = vsyncpa [#allocation6], 1 }

// kernel: tpu_custom_call.1
= control target key start
LH: loop header
LB: loop body
LE: loop exit
PB: predicated region body
PF: predicated region fallthrough
CT: control target
= control target key end

     0   :  { %s1479_s30 = smov [#allocation3]   ;;  %s1936_s0 = inlined_call_operand.hbm [shape: f32[3], index: 0, kind: input, shape index: {}]   ;;  %s1937_s1 = inlined_call_operand.hbm [shape: f32[8,128], index: 1, kind: input, shape index: {}]   ;;  %s1938_s2 = inlined_call_operand.hbm [shape: bf16[128,256], index: 2, kind: input, shape index: {}]   ;;  %s1939_s3 = inlined_call_operand.hbm [shape: bf16[256,128], index: 3, kind: input, shape index: {}]   ;;  %s1940_s4 = inlined_call_operand.hbm [shape: bf16[256,128], index: 4, kind: input, shape index: {}]   ;;  %s1941_s5 = inlined_call_operand.vmem [shape: f32[1,128], index: 5, kind: input, shape index: {}]   ;;  %s1942_s6 = inlined_call_operand.hbm [shape: bf16[128,256], index: 6, kind: input, shape index: {}]   ;;  %s1943_s7 = inlined_call_operand.vmem [shape: f32[1,256], index: 7, kind: input, shape index: {}]   ;;  %s1944_s8 = inlined_call_operand.hbm [shape: f32[8,256], index: 8, kind: output, shape index: {}]  }
   0x1   :  { %s14_s29 = sshll.u32 %s1936_s0, 4  ;;  %s15_s29 = int_to_ptr.hbm [resolvable:$true] %s14_s29 }
   0x2   :  { %17 = dma.hbm_to_smem %s15_s29, 16, %s1479_s30, [#allocation2] }
   0x3   :  { %1469 = dma.done.wait [#allocation2], 16 }
   0x4   :  { %1470 = vsyncadd [#allocation2], 4294967280 }
   0x5   :  { %20 = sfence }
   0x6   :  { %21 = vsyncpa [#allocation5], 0 }
   0x7   :  { %22 = vsyncpa [#allocation8], 0 }
   0x8   :  { %23 = vsyncpa [#allocation11], 0  ;;  %s40_s11 = sshll.u32 %s1938_s2, 4  ;;  %s41_s11 = int_to_ptr.hbm [resolvable:$true] %s40_s11 }
   0x9   :  { %24 = vsyncpa [#allocation6], 0  ;;  %s1480_s12 = smov [#allocation7]   ;;  %s1481_s14 = smov 128  }
   0xa   :  { %s42_s13 = sshll.u32 %s1480_s12, 4  ;;  %s1482_s0 = smov 8   ;;  %s43_s13 = int_to_ptr.vmem [resolvable:$true] %s42_s13 }
   0xb   :  { %48 = dma.hbm_to_vmem [thread:$0]  %s41_s11, 2048, %s43_s13, [#allocation8], %s1481_s14, %s1481_s14, %s1482_s0  }
   0xc   :  { %s66_s17 = sshll.u32 %s1940_s4, 4  ;;  %s1483_s18 = smov [#allocation10]   ;;  %s67_s17 = int_to_ptr.hbm [resolvable:$true] %s66_s17 }
   0xd   :  { %s68_s19 = sshll.u32 %s1483_s18, 4  ;;  %s30_s21 = sshll.u32 %s1937_s1, 4  ;;  %s69_s19 = int_to_ptr.vmem [resolvable:$true] %s68_s19  ;;  %s31_s21 = int_to_ptr.hbm [resolvable:$true] %s30_s21 }
   0xe   :  { %s1484_s22 = smov 64   ;;  %s1485_s23 = smov 4  }
   0xf   :  { %74 = dma.hbm_to_vmem [thread:$0]  %s67_s17, 2048, %s69_s19, [#allocation11], %s1484_s22, %s1484_s22, %s1485_s23  }
  0x10   :  { %s53_s26 = sshll.u32 %s1939_s3, 4  ;;  %s1486_s27 = smov [#allocation4]   ;;  %s54_s26 = int_to_ptr.hbm [resolvable:$true] %s53_s26 }
  0x11   :  { %s32_s28 = sshll.u32 %s1486_s27, 4  ;;  %s1487_s4 = smov [#allocation9]   ;;  %s33_s28 = int_to_ptr.vmem [resolvable:$true] %s32_s28 }
  0x12   :  { %35 = dma.hbm_to_vmem [thread:$0]  %s31_s21, 128, %s33_s28, [#allocation5]  }
  0x13   :  { %s55_s29 = sshll.u32 %s1487_s4, 4  ;;  %s81_s1 = sshll.u32 %s1942_s6, 4  ;;  %s56_s29 = int_to_ptr.vmem [resolvable:$true] %s55_s29  ;;  %s82_s1 = int_to_ptr.hbm [resolvable:$true] %s81_s1 }
  0x14   :  { %61 = dma.hbm_to_vmem [thread:$0]  %s54_s26, 2048, %s56_s29, [#allocation8], %s1484_s22, %s1484_s22, %s1485_s23  }
  0x15   :  { %s1488_s10 = smov [#allocation12]  }
  0x16   :  { %s83_s11 = sshll.u32 %s1488_s10, 4  ;;  %s84_s11 = int_to_ptr.vmem [resolvable:$true] %s83_s11 }
  0x17   :  { %89 = dma.hbm_to_vmem [thread:$0]  %s82_s1, 2048, %s84_s11, [#allocation11], %s1481_s14, %s1481_s14, %s1482_s0  }
  0x18   :  { %1471 = dma.done.wait [#allocation5], 128  }
  0x19   :  { %1472 = vsyncadd [#allocation5], 4294967168 }
  0x1a   :  { %1473 = dma.done.wait [#allocation8], 4096  }
  0x1b   :  { %1474 = vsyncadd [#allocation8], 4294963200 }
  0x1c   :  { %1475 = dma.done.wait [#allocation11], 4096  }
  0x1d   :  { %1476 = vsyncadd [#allocation11], 4294963200  ;;  %v1037_v0 = vld [vmem:[#allocation7 + $0x70] sm:$0xf]  ;;  %v1252_v1 = vld [vmem:[#allocation7 + $0x74] sm:$0xf0] }
  0x1e   :  { %v1251_v2 = vld [vmem:[#allocation7 + $0x74] sm:$0xf]  ;;  %v1559_v3 = vor.u32 %v1252_v1, %v1037_v0  ;;  %v1039_v4 = vld [vmem:[#allocation7 + $0x78] sm:$0xf0]  ;;  %v1029_v5 = vld [vmem:[#allocation7 + $0x60] sm:$0xf] }
  0x1f   :  { %v1250_v6 = vld [vmem:[#allocation7 + $0x64] sm:$0xf0]  ;;  %v1561_v7 = vor.u32 %v1251_v2, %v1039_v4  ;;  %v1249_v8 = vld [vmem:[#allocation7 + $0x64] sm:$0xf]  ;;  %v1031_v9 = vld [vmem:[#allocation7 + $0x68] sm:$0xf0] }
  0x20   :  { %292 = vmatpush.bf16.msra.mxu0 %v1559_v3  ;;  %v1564_v10 = vor.u32 %v1250_v6, %v1029_v5  ;;  %v1567_v11 = vor.u32 %v1249_v8, %v1031_v9  ;;  %v1021_v12 = vld [vmem:[#allocation7 + $0x50] sm:$0xf]  ;;  %v1248_v13 = vld [vmem:[#allocation7 + $0x54] sm:$0xf0]  ;;  %v1247_v14 = vld [vmem:[#allocation7 + $0x54] sm:$0xf] }
  0x21   :  { %305 = vmatpush.bf16.msra.mxu1 %v1561_v7  ;;  %v1023_v15 = vld [vmem:[#allocation7 + $0x58] sm:$0xf0]  ;;  %v1570_v16 = vor.u32 %v1248_v13, %v1021_v12  ;;  %v1013_v18 = vld [vmem:[#allocation7 + $0x40] sm:$0xf]  ;;  %v1246_v19 = vld [vmem:[#allocation7 + $0x44] sm:$0xf0] }
  0x22   :  { %v1573_v17 = vor.u32 %v1247_v14, %v1023_v15  ;;  %v1245_v20 = vld [vmem:[#allocation7 + $0x44] sm:$0xf]  ;;  %v1015_v21 = vld [vmem:[#allocation7 + $0x48] sm:$0xf0]  ;;  %v1576_v22 = vor.u32 %v1246_v19, %v1013_v18  ;;  %v1578_v23 = vld [vmem:[#allocation10 + $0x38] sm:$0xff]  ;;  %s1235_s13 = sld [smem:[#allocation3 + $0x1]] }
  0x23   :  { %1970 = vst [vmem:[#allocation19_spill] sm:$0xff] %v1570_v16  ;;  %v1580_v24 = vld [vmem:[#allocation10 + $0x78] sm:$0xff]  ;;  %v1583_v25 = vor.u32 %v1245_v20, %v1015_v21  ;;  %v1005_v26 = vld [vmem:[#allocation7 + $0x30] sm:$0xf]  ;;  %v1243_v28 = vld [vmem:[#allocation7 + $0x34] sm:$0xf]  ;;  %419 = vmatpush.bf16.msra.mxu2 %v1578_v23 }
  0x24   :  { %293 = vmatpush.bf16.msra.mxu0 %v1564_v10  ;;  %1971 = vst [vmem:[#allocation20_spill] sm:$0xff] %v1573_v17  ;;  %v1244_v27 = vld [vmem:[#allocation7 + $0x34] sm:$0xf0]  ;;  %v1007_v29 = vld [vmem:[#allocation7 + $0x38] sm:$0xf0]  ;;  %432 = vmatpush.bf16.msra.mxu3 %v1580_v24  ;;  %v1587_v30 = vld [vmem:[#allocation10 + $0x30] sm:$0xff] }
  0x25   :  { %306 = vmatpush.bf16.msra.mxu1 %v1567_v11  ;;  %1972 = vst [vmem:[#allocation21_spill] sm:$0xff] %v1576_v22  ;;  %v1589_v31 = vld [vmem:[#allocation10 + $0x70] sm:$0xff]  ;;  %v1592_v32 = vor.u32 %v1244_v27, %v1005_v26  ;;  %v1595_v33 = vor.u32 %v1243_v28, %v1007_v29  ;;  %v997_v34 = vld [vmem:[#allocation7 + $0x20] sm:$0xf]  ;;  %v1242_v35 = vld [vmem:[#allocation7 + $0x24] sm:$0xf0] }
  0x26   :  { %1973 = vst [vmem:[#allocation22_spill] sm:$0xff] %v1583_v25  ;;  %v1241_v36 = vld [vmem:[#allocation7 + $0x24] sm:$0xf]  ;;  %v999_v37 = vld [vmem:[#allocation7 + $0x28] sm:$0xf0]  ;;  %v1604_v40 = vor.u32 %v1242_v35, %v997_v34  ;;  %v1623_v54 = vld [vmem:[#allocation10 + $0x18] sm:$0xff] }
  0x27   :  { %1974 = vst [vmem:[#allocation23_spill] sm:$0xff] %v1592_v32  ;;  %420 = vmatpush.bf16.msra.mxu2 %v1587_v30  ;;  %v1599_v38 = vld [vmem:[#allocation10 + $0x28] sm:$0xff]  ;;  %v1607_v41 = vor.u32 %v1241_v36, %v999_v37  ;;  %v989_v42 = vld [vmem:[#allocation7 + $0x10] sm:$0xf]  ;;  %v1240_v43 = vld [vmem:[#allocation7 + $0x14] sm:$0xf0] }
  0x28   :  { %294 = vmatpush.bf16.msra.mxu0 %v1570_v16  ;;  %1975 = vst [vmem:[#allocation24_spill] sm:$0xff] %v1595_v33  ;;  %433 = vmatpush.bf16.msra.mxu3 %v1589_v31  ;;  %v1601_v39 = vld [vmem:[#allocation10 + $0x68] sm:$0xff]  ;;  %v1239_v44 = vld [vmem:[#allocation7 + $0x14] sm:$0xf]  ;;  %v991_v45 = vld [vmem:[#allocation7 + $0x18] sm:$0xf0]  ;;  %v1616_v48 = vor.u32 %v1240_v43, %v989_v42 }
  0x29   :  { %307 = vmatpush.bf16.msra.mxu1 %v1573_v17  ;;  %1976 = vst [vmem:[#allocation25_spill] sm:$0xff] %v1604_v40  ;;  %v1611_v46 = vld [vmem:[#allocation10 + $0x20] sm:$0xff]  ;;  %v1619_v49 = vor.u32 %v1239_v44, %v991_v45  ;;  %v1238_v51 = vld [vmem:[#allocation7 + $0x4] sm:$0xf0]  ;;  %v983_v53 = vld [vmem:[#allocation7 + $0x8] sm:$0xf0] }
  0x2a   :  { %1977 = vst [vmem:[#allocation26_spill] sm:$0xff] %v1607_v41  ;;  %v1613_v47 = vld [vmem:[#allocation10 + $0x60] sm:$0xff]  ;;  %v1625_v55 = vld [vmem:[#allocation10 + $0x58] sm:$0xff]  ;;  %v1637_v59 = vld [vmem:[#allocation10 + $0x10] sm:$0xff]  ;;  %s1236_s14 = sld [smem:[#allocation3 + $0x2]]  ;;  %s1489_s0 = smov [#allocation13]  }
  0x2b   :  { %421 = vmatpush.bf16.msra.mxu2 %v1599_v38  ;;  %1978 = vst [vmem:[#allocation27_spill] sm:$0xff] %v1616_v48  ;;  %v981_v50 = vld [vmem:[#allocation7] sm:$0xf]  ;;  %v1237_v52 = vld [vmem:[#allocation7 + $0x4] sm:$0xf]  ;;  %v1630_v57 = vld [vmem:[#allocation4] sm:$0xff] }
  0x2c   :  { %295 = vmatpush.bf16.msra.mxu0 %v1576_v22  ;;  %434 = vmatpush.bf16.msra.mxu3 %v1601_v39  ;;  %v1628_v56 = vor.u32 %v1238_v51, %v981_v50  ;;  %v1633_v58 = vor.u32 %v1237_v52, %v983_v53  ;;  %v1639_v60 = vld [vmem:[#allocation10 + $0x50] sm:$0xff]  ;;  %v211_v61 = vpack.c.bf16 %v1630_v57, %v1630_v57  ;;  %v1647_v62 = vld [vmem:[#allocation10 + $0x8] sm:$0xff]  ;;  %v1653_v0 = vld [vmem:[#allocation10] sm:$0xff]  ;;  %s965_s15 = sshll.u32 %s1489_s0, 4  ;;  %s967_s18 = sshll.u32 %s1944_s8, 4  ;;  %s966_s15 = int_to_ptr.vmem [resolvable:$true] %s965_s15  ;;  %s968_s18 = int_to_ptr.hbm [resolvable:$true] %s967_s18 }
  0x2d   :  { %308 = vmatpush.bf16.msra.mxu1 %v1583_v25  ;;  %v1649_v63 = vld [vmem:[#allocation10 + $0x48] sm:$0xff]  ;;  %v1655_v1 = vld [vmem:[#allocation10 + $0x40] sm:$0xff]  ;;  %v1165_v2 = vld [vmem:[#allocation12 + $0x70] sm:$0xf] }
  0x2e   :  { %v1300_v4 = vld [vmem:[#allocation12 + $0x74] sm:$0xf0]  ;;  %v1299_v5 = vld [vmem:[#allocation12 + $0x74] sm:$0xf]  ;;  %v1167_v8 = vld [vmem:[#allocation12 + $0x78] sm:$0xf0] }
  0x2f   :  { %422 = vmatpush.bf16.msra.mxu2 %v1611_v46  ;;  %v1659_v6 = vor.u32 %v1300_v4, %v1165_v2  ;;  %v1157_v9 = vld [vmem:[#allocation12 + $0x60] sm:$0xf]  ;;  %v1298_v12 = vld [vmem:[#allocation12 + $0x64] sm:$0xf0]  ;;  %v1661_v13 = vor.u32 %v1299_v5, %v1167_v8  ;;  %v1297_v14 = vld [vmem:[#allocation12 + $0x64] sm:$0xf] }
  0x30   :  { %296 = vmatpush.bf16.msra.mxu0 %v1592_v32  ;;  %435 = vmatpush.bf16.msra.mxu3 %v1613_v47  ;;  %v1159_v15 = vld [vmem:[#allocation12 + $0x68] sm:$0xf0]  ;;  %v1664_v18 = vor.u32 %v1298_v12, %v1157_v9  ;;  %v1149_v20 = vld [vmem:[#allocation12 + $0x50] sm:$0xf]  ;;  %v1296_v21 = vld [vmem:[#allocation12 + $0x54] sm:$0xf0] }
  0x31   :  { %309 = vmatpush.bf16.msra.mxu1 %v1595_v33  ;;  %v1667_v19 = vor.u32 %v1297_v14, %v1159_v15  ;;  %v1295_v26 = vld [vmem:[#allocation12 + $0x54] sm:$0xf]  ;;  %v1151_v27 = vld [vmem:[#allocation12 + $0x58] sm:$0xf0]  ;;  %v1670_v28 = vor.u32 %v1296_v21, %v1149_v20  ;;  %v1141_v34 = vld [vmem:[#allocation12 + $0x40] sm:$0xf] }
  0x32   :  { %v1673_v29 = vor.u32 %v1295_v26, %v1151_v27  ;;  %v1294_v35 = vld [vmem:[#allocation12 + $0x44] sm:$0xf0]  ;;  %v1293_v36 = vld [vmem:[#allocation12 + $0x44] sm:$0xf]  ;;  %v1143_v37 = vld [vmem:[#allocation12 + $0x48] sm:$0xf0] }
  0x33   :  { %423 = vmatpush.bf16.msra.mxu2 %v1623_v54  ;;  %v1676_v42 = vor.u32 %v1294_v35, %v1141_v34  ;;  %v1679_v43 = vor.u32 %v1293_v36, %v1143_v37  ;;  %v1133_v44 = vld [vmem:[#allocation12 + $0x30] sm:$0xf]  ;;  %v1292_v45 = vld [vmem:[#allocation12 + $0x34] sm:$0xf0]  ;;  %v1291_v50 = vld [vmem:[#allocation12 + $0x34] sm:$0xf] }
  0x34   :  { %297 = vmatpush.bf16.msra.mxu0 %v1604_v40  ;;  %436 = vmatpush.bf16.msra.mxu3 %v1625_v55  ;;  %v1135_v51 = vld [vmem:[#allocation12 + $0x38] sm:$0xf0]  ;;  %v1682_v52 = vor.u32 %v1292_v45, %v1133_v44  ;;  %v1290_v2 = vld [vmem:[#allocation12 + $0x24] sm:$0xf0]  ;;  %v1289_v4 = vld [vmem:[#allocation12 + $0x24] sm:$0xf] }
  0x35   :  { %310 = vmatpush.bf16.msra.mxu1 %v1607_v41  ;;  %v1685_v53 = vor.u32 %v1291_v50, %v1135_v51  ;;  %v1127_v5 = vld [vmem:[#allocation12 + $0x28] sm:$0xf0]  ;;  %v1117_v27 = vld [vmem:[#allocation12 + $0x10] sm:$0xf]  ;;  %v1288_v34 = vld [vmem:[#allocation12 + $0x14] sm:$0xf0] }
  0x36   :  { %1979 = vst [vmem:[#allocation28_spill] sm:$0xff] %v1682_v52  ;;  %v1691_v9 = vor.u32 %v1289_v4, %v1127_v5  ;;  %v1287_v35 = vld [vmem:[#allocation12 + $0x14] sm:$0xf]  ;;  %v1703_v36 = vor.u32 %v1288_v34, %v1117_v27  ;;  %v1119_v37 = vld [vmem:[#allocation12 + $0x18] sm:$0xf0]  ;;  %v1733_v27 = vld [vmem:[#allocation9 + $0x68] sm:$0xff] }
  0x37   :  { %424 = vmatpush.bf16.msra.mxu2 %v1637_v59  ;;  %1980 = vst [vmem:[#allocation29_spill] sm:$0xff] %v1685_v53  ;;  %v1705_v44 = vor.u32 %v1287_v35, %v1119_v37  ;;  %v1109_v45 = vld [vmem:[#allocation12] sm:$0xf]  ;;  %v1286_v50 = vld [vmem:[#allocation12 + $0x4] sm:$0xf0]  ;;  %v1716_v5 = vld [vmem:[#allocation9 + $0x38] sm:$0xff] }
  0x38   :  { %298 = vmatpush.bf16.msra.mxu0 %v1616_v48  ;;  %437 = vmatpush.bf16.msra.mxu3 %v1639_v60  ;;  %1982 = vst [vmem:[#allocation31_spill] sm:$0xff] %v1691_v9  ;;  %v1285_v51 = vld [vmem:[#allocation12 + $0x4] sm:$0xf]  ;;  %v1747_v37 = vld [vmem:[#allocation9 + $0x18] sm:$0xff] }
  0x39   :  { %311 = vmatpush.bf16.msra.mxu1 %v1619_v49  ;;  %1983 = vst [vmem:[#allocation32_spill] sm:$0xff] %v1703_v36  ;;  %v1739_v34 = vld [vmem:[#allocation9 + $0x20] sm:$0xff] }
  0x3a   :  { %1984 = vst [vmem:[#allocation33_spill] sm:$0xff] %v1705_v44  ;;  %v1741_v35 = vld [vmem:[#allocation9 + $0x60] sm:$0xff] }
  0x3b   :  { %425 = vmatpush.bf16.msra.mxu2 %v1647_v62 }
  0x3c   :  { %299 = vmatpush.bf16.msra.mxu0 %v1628_v56  ;;  %438 = vmatpush.bf16.msra.mxu3 %v1649_v63 }
  0x3d   :  { %312 = vmatpush.bf16.msra.mxu1 %v1633_v58 }
  0x3f   :  { %300 = vmatmul.bf16.vlgmr.msra.gmra.mxu0 %v211_v61  ;;  %426 = vmatpush.bf16.msra.mxu2 %v1653_v0 }
  0x40   :  { %313 = vmatmul.bf16.vlgmr.msra.gmra.mxu1 %v211_v61  ;;  %439 = vmatpush.bf16.msra.mxu3 %v1655_v1  ;;  %v1125_v61 = vld [vmem:[#allocation12 + $0x20] sm:$0xf] }
  0x41   :  { %532 = vmatpush.bf16.msrb.mxu0 %v1659_v6  ;;  %545 = vmatpush.bf16.msrb.mxu1 %v1661_v13  ;;  %v1688_v8 = vor.u32 %v1290_v2, %v1125_v61  ;;  %v1709_v61 = vor.u32 %v1286_v50, %v1109_v45  ;;  %v1111_v2 = vld [vmem:[#allocation12 + $0x8] sm:$0xf0]  ;;  %v1749_v45 = vld [vmem:[#allocation9 + $0x58] sm:$0xff]  ;;  %v1755_v50 = vld [vmem:[#allocation9 + $0x10] sm:$0xff] }
  0x42   :  { %v1711_v4 = vor.u32 %v1285_v51, %v1111_v2  ;;  %v1757_v51 = vld [vmem:[#allocation9 + $0x50] sm:$0xff]  ;;  %v1763_v2 = vld [vmem:[%s1941_s5] ss:$0 sm:$0xff] }
  0x43   :  { %1981 = vst [vmem:[#allocation30_spill] sm:$0xff] %v1688_v8  ;;  %658 = vmatpush.bf16.msrb.mxu2 %v1716_v5 }
  0x44   :  { %1985 = vst [vmem:[#allocation34_spill] sm:$0xff] %v1709_v61 }
  0x45   :  { %533 = vmatpush.bf16.msrb.mxu0 %v1664_v18  ;;  %546 = vmatpush.bf16.msrb.mxu1 %v1667_v19  ;;  %1986 = vst [vmem:[#allocation35_spill] sm:$0xff] %v1711_v4 }
  0x49   :  { %534 = vmatpush.bf16.msrb.mxu0 %v1670_v28  ;;  %547 = vmatpush.bf16.msrb.mxu1 %v1673_v29 }
  0x4d   :  { %535 = vmatpush.bf16.msrb.mxu0 %v1676_v42  ;;  %548 = vmatpush.bf16.msrb.mxu1 %v1679_v43 }
  0x51   :  { %536 = vmatpush.bf16.msrb.mxu0 %v1682_v52  ;;  %549 = vmatpush.bf16.msrb.mxu1 %v1685_v53 }
  0x55   :  { %537 = vmatpush.bf16.msrb.mxu0 %v1688_v8  ;;  %550 = vmatpush.bf16.msrb.mxu1 %v1691_v9 }
  0x59   :  { %538 = vmatpush.bf16.msrb.mxu0 %v1703_v36  ;;  %551 = vmatpush.bf16.msrb.mxu1 %v1705_v44 }
  0x5d   :  { %539 = vmatpush.bf16.msrb.mxu0 %v1709_v61  ;;  %552 = vmatpush.bf16.msrb.mxu1 %v1711_v4 }
  0x61   :  { %686 = vmatpush.bf16.msra.mxu0 %v1559_v3  ;;  %699 = vmatpush.bf16.msra.mxu1 %v1561_v7 }
  0x65   :  { %687 = vmatpush.bf16.msra.mxu0 %v1564_v10  ;;  %700 = vmatpush.bf16.msra.mxu1 %v1567_v11 }
  0x69   :  { %688 = vmatpush.bf16.msra.mxu0 %v1570_v16  ;;  %701 = vmatpush.bf16.msra.mxu1 %v1573_v17 }
  0x6d   :  { %689 = vmatpush.bf16.msra.mxu0 %v1576_v22  ;;  %702 = vmatpush.bf16.msra.mxu1 %v1583_v25 }
  0x71   :  { %690 = vmatpush.bf16.msra.mxu0 %v1592_v32  ;;  %703 = vmatpush.bf16.msra.mxu1 %v1595_v33 }
  0x75   :  { %691 = vmatpush.bf16.msra.mxu0 %v1604_v40  ;;  %704 = vmatpush.bf16.msra.mxu1 %v1607_v41 }
  0x79   :  { %692 = vmatpush.bf16.msra.mxu0 %v1616_v48  ;;  %705 = vmatpush.bf16.msra.mxu1 %v1619_v49 }
  0x7d   :  { %693 = vmatpush.bf16.msra.mxu0 %v1628_v56  ;;  %706 = vmatpush.bf16.msra.mxu1 %v1633_v58 }
  0xbc   :  { %v1693_v12 = vpop.f32.mrf.mxu0 }
  0xbd   :  { %v1696_v14 = vpop.f32.mrf.mxu1  ;;  %v318_v15 = vpack.c.bf16 %v1693_v12, %v1693_v12 }
  0xbe   :  { %v319_v20 = vpack.c.bf16 %v1696_v14, %v1696_v14 }
  0xbf   :  { %427 = vmatmul.bf16.vlgmr.msra.gmra.mxu2 %v318_v15  ;;  %v1718_v15 = vld [vmem:[#allocation9 + $0x78] sm:$0xff] }
  0xc0   :  { %440 = vmatmul.bf16.vlgmr.msra.gmra.mxu3 %v319_v20  ;;  %v1723_v20 = vld [vmem:[#allocation9 + $0x30] sm:$0xff] }
  0xc1   :  { %671 = vmatpush.bf16.msrb.mxu3 %v1718_v15  ;;  %659 = vmatpush.bf16.msrb.mxu2 %v1723_v20 }
  0xc4   :  { %v303_v21 = vpop.f32.mrf.mxu0 }
  0xc5   :  { %v316_v26 = vpop.f32.mrf.mxu1  ;;  %v1725_v21 = vld [vmem:[#allocation9 + $0x70] sm:$0xff] }
  0xc6   :  { %672 = vmatpush.bf16.msrb.mxu3 %v1725_v21  ;;  %v1731_v26 = vld [vmem:[#allocation9 + $0x28] sm:$0xff] }
  0xc7   :  { %660 = vmatpush.bf16.msrb.mxu2 %v1731_v26 }
  0xca   :  { %673 = vmatpush.bf16.msrb.mxu3 %v1733_v27 }
  0xcb   :  { %661 = vmatpush.bf16.msrb.mxu2 %v1739_v34 }
  0xce   :  { %674 = vmatpush.bf16.msrb.mxu3 %v1741_v35 }
  0xcf   :  { %662 = vmatpush.bf16.msrb.mxu2 %v1747_v37 }
  0xd2   :  { %675 = vmatpush.bf16.msrb.mxu3 %v1749_v45 }
  0xd3   :  { %663 = vmatpush.bf16.msrb.mxu2 %v1755_v50 }
  0xd6   :  { %676 = vmatpush.bf16.msrb.mxu3 %v1757_v51 }
 0x142   :  { %v428_v33 = vpop.f32.mrf.mxu2 }
 0x143   :  { %v429_v32 = vadd.f32 %v1763_v2, %v428_v33  ;;  %v441_v25 = vpop.f32.mrf.mxu3 }
 0x145   :  { %v442_v40 = vadd.f32 %v441_v25, %v429_v32  ;;  %v1797_v25 = vld [vmem:[#allocation9 + $0x40] sm:$0xff]  ;;  %v209_v32 = vld [vmem:[%s1943_s7] sm:$0x3]  ;;  %s712_s7 = sld [smem:[#allocation3]] }
 0x146   :  { %v1816_v33 = vperm.slane %v209_v32, 0 }
 0x147   :  { %v445_v22 = vmax.f32 %v442_v40, 0.0  ;;  %v1818_v40 = vperm.slane %v209_v32, 1 }
 0x149   :  { %v446_v17 = vpack.c.bf16 %v445_v22, %v445_v22  ;;  %v1795_v22 = vld [vmem:[#allocation9] sm:$0xff] }
 0x14a   :  { %v430_v41 = vpop.f32.mrf.mxu2 }
 0x14b   :  { %v443_v16 = vpop.f32.mrf.mxu3  ;;  %540 = vmatmul.bf16.vlgmr.msrb.gmra.mxu0 %v446_v17  ;;  %553 = vmatmul.bf16.vlgmr.msrb.gmra.mxu1 %v446_v17  ;;  %v1791_v17 = vld [vmem:[#allocation9 + $0x48] sm:$0xff] }
 0x14c   :  { %748 = vmatpush.bf16.msrb.mxu0 %v1659_v6  ;;  %761 = vmatpush.bf16.msrb.mxu1 %v1661_v13  ;;  %v1789_v16 = vld [vmem:[#allocation9 + $0x8] sm:$0xff] }
 0x14d   :  { %664 = vmatpush.bf16.msrb.mxu2 %v1789_v16  ;;  %677 = vmatpush.bf16.msrb.mxu3 %v1791_v17 }
 0x150   :  { %749 = vmatpush.bf16.msrb.mxu0 %v1664_v18  ;;  %762 = vmatpush.bf16.msrb.mxu1 %v1667_v19 }
 0x151   :  { %665 = vmatpush.bf16.msrb.mxu2 %v1795_v22  ;;  %678 = vmatpush.bf16.msrb.mxu3 %v1797_v25 }
 0x154   :  { %750 = vmatpush.bf16.msrb.mxu0 %v1670_v28  ;;  %763 = vmatpush.bf16.msrb.mxu1 %v1673_v29 }
 0x155   :  { %720 = vmatpush.bf16.msra.mxu2 %v1578_v23  ;;  %733 = vmatpush.bf16.msra.mxu3 %v1580_v24 }
 0x158   :  { %751 = vmatpush.bf16.msrb.mxu0 %v1676_v42  ;;  %764 = vmatpush.bf16.msrb.mxu1 %v1679_v43 }
 0x159   :  { %721 = vmatpush.bf16.msra.mxu2 %v1587_v30  ;;  %734 = vmatpush.bf16.msra.mxu3 %v1589_v31 }
 0x15c   :  { %752 = vmatpush.bf16.msrb.mxu0 %v1682_v52  ;;  %765 = vmatpush.bf16.msrb.mxu1 %v1685_v53 }
 0x15d   :  { %722 = vmatpush.bf16.msra.mxu2 %v1599_v38  ;;  %735 = vmatpush.bf16.msra.mxu3 %v1601_v39 }
 0x160   :  { %753 = vmatpush.bf16.msrb.mxu0 %v1688_v8  ;;  %766 = vmatpush.bf16.msrb.mxu1 %v1691_v9 }
 0x161   :  { %723 = vmatpush.bf16.msra.mxu2 %v1611_v46  ;;  %736 = vmatpush.bf16.msra.mxu3 %v1613_v47 }
 0x164   :  { %754 = vmatpush.bf16.msrb.mxu0 %v1703_v36  ;;  %767 = vmatpush.bf16.msrb.mxu1 %v1705_v44 }
 0x165   :  { %724 = vmatpush.bf16.msra.mxu2 %v1623_v54  ;;  %737 = vmatpush.bf16.msra.mxu3 %v1625_v55 }
 0x168   :  { %755 = vmatpush.bf16.msrb.mxu0 %v1709_v61  ;;  %768 = vmatpush.bf16.msrb.mxu1 %v1711_v4 }
 0x169   :  { %725 = vmatpush.bf16.msra.mxu2 %v1637_v59  ;;  %738 = vmatpush.bf16.msra.mxu3 %v1639_v60 }
 0x16d   :  { %726 = vmatpush.bf16.msra.mxu2 %v1647_v62  ;;  %739 = vmatpush.bf16.msra.mxu3 %v1649_v63 }
 0x171   :  { %727 = vmatpush.bf16.msra.mxu2 %v1653_v0  ;;  %740 = vmatpush.bf16.msra.mxu3 %v1655_v1 }
 0x1c8   :  { %v541_v41 = vpop.f32.mrf.mxu0  ;;  %v554_v4 = vpop.f32.mrf.mxu1 }
 0x1c9   :  { %v542_v61 = vadd.f32 %v541_v41, %v1816_v33  ;;  %v555_v44 = vadd.f32 %v554_v4, %v1818_v40  ;;  %v1987_v4 = vld [vmem:[#allocation19_spill] sm:$0xff]  ;;  %v1988_v41 = vld [vmem:[#allocation20_spill] sm:$0xff] }
 0x1cb   :  { %v558_v36 = vadd.f32 %v542_v61, %v1693_v12  ;;  %v559_v9 = vadd.f32 %v555_v44, %v1696_v14 }
 0x1cd   :  { %v560_v32 = vpack.c.bf16 %v558_v36, %v558_v36  ;;  %v561_v8 = vpack.c.bf16 %v559_v9, %v559_v9 }
 0x1cf   :  { %666 = vmatmul.bf16.vlgmr.msrb.gmra.mxu2 %v560_v32  ;;  %679 = vmatmul.bf16.vlgmr.msrb.gmra.mxu3 %v561_v8  ;;  %v1989_v32 = vld [vmem:[#allocation21_spill] sm:$0xff] }
 0x1d0   :  { %v543_v53 = vpop.f32.mrf.mxu0  ;;  %v556_v52 = vpop.f32.mrf.mxu1  ;;  %778 = vmatpush.bf16.msrb.mxu2 %v1716_v5  ;;  %791 = vmatpush.bf16.msrb.mxu3 %v1718_v15 }
 0x1d4   :  { %779 = vmatpush.bf16.msrb.mxu2 %v1723_v20  ;;  %792 = vmatpush.bf16.msrb.mxu3 %v1725_v21 }
 0x1d8   :  { %780 = vmatpush.bf16.msrb.mxu2 %v1731_v26  ;;  %793 = vmatpush.bf16.msrb.mxu3 %v1733_v27 }
 0x1dc   :  { %781 = vmatpush.bf16.msrb.mxu2 %v1739_v34  ;;  %794 = vmatpush.bf16.msrb.mxu3 %v1741_v35 }
 0x1e0   :  { %782 = vmatpush.bf16.msrb.mxu2 %v1747_v37  ;;  %795 = vmatpush.bf16.msrb.mxu3 %v1749_v45 }
 0x1e4   :  { %783 = vmatpush.bf16.msrb.mxu2 %v1755_v50  ;;  %796 = vmatpush.bf16.msrb.mxu3 %v1757_v51 }
 0x1e8   :  { %784 = vmatpush.bf16.msrb.mxu2 %v1789_v16  ;;  %797 = vmatpush.bf16.msrb.mxu3 %v1791_v17 }
 0x1ec   :  { %785 = vmatpush.bf16.msrb.mxu2 %v1795_v22  ;;  %798 = vmatpush.bf16.msrb.mxu3 %v1797_v25 }
 0x252   :  { %v667_v52 = vpop.f32.mrf.mxu2  ;;  %v680_v53 = vpop.f32.mrf.mxu3 }
 0x253   :  { %v681_v8 = vadd.f32 %v680_v53, %v667_v52  ;;  %v1990_v52 = vld [vmem:[#allocation22_spill] sm:$0xff]  ;;  %v1991_v53 = vld [vmem:[#allocation23_spill] sm:$0xff] }
 0x255   :  { %v684_v12 = vsub.f32 %v681_v8, %v1630_v57  ;;  %v1992_v8 = vld [vmem:[#allocation24_spill] sm:$0xff] }
 0x257   :  { %v685_v14 = vpack.c.bf16 %v684_v12, %v684_v12  ;;  %v1993_v12 = vld [vmem:[#allocation25_spill] sm:$0xff] }
 0x259   :  { %694 = vmatmul.bf16.vlgmr.msra.gmra.mxu0 %v685_v14  ;;  %707 = vmatmul.bf16.vlgmr.msra.gmra.mxu1 %v685_v14  ;;  %v1994_v14 = vld [vmem:[#allocation26_spill] sm:$0xff] }
 0x25a   :  { %v669_v44 = vpop.f32.mrf.mxu2  ;;  %v682_v61 = vpop.f32.mrf.mxu3  ;;  %806 = vmatpush.bf16.msra.mxu0 %v1559_v3  ;;  %819 = vmatpush.bf16.msra.mxu1 %v1561_v7 }
 0x25b   :  { %v713_v44 = vstv %s712_s7 }
 0x25e   :  { %807 = vmatpush.bf16.msra.mxu0 %v1564_v10  ;;  %820 = vmatpush.bf16.msra.mxu1 %v1567_v11 }
 0x262   :  { %808 = vmatpush.bf16.msra.mxu0 %v1987_v4  ;;  %821 = vmatpush.bf16.msra.mxu1 %v1988_v41 }
 0x266   :  { %809 = vmatpush.bf16.msra.mxu0 %v1989_v32  ;;  %822 = vmatpush.bf16.msra.mxu1 %v1990_v52 }
 0x26a   :  { %810 = vmatpush.bf16.msra.mxu0 %v1991_v53  ;;  %823 = vmatpush.bf16.msra.mxu1 %v1992_v8 }
 0x26e   :  { %811 = vmatpush.bf16.msra.mxu0 %v1993_v12  ;;  %824 = vmatpush.bf16.msra.mxu1 %v1994_v14 }
 0x272   :  { %812 = vmatpush.bf16.msra.mxu0 %v1616_v48  ;;  %825 = vmatpush.bf16.msra.mxu1 %v1619_v49 }
 0x276   :  { %813 = vmatpush.bf16.msra.mxu0 %v1628_v56  ;;  %826 = vmatpush.bf16.msra.mxu1 %v1633_v58 }
 0x2d6   :  { %v695_v61 = vpop.f32.mrf.mxu0  ;;  %v708_v52 = vpop.f32.mrf.mxu1 }
 0x2d7   :  { %v714_v32 = vmul.f32 %v713_v44, %v695_v61  ;;  %v715_v53 = vmul.f32 %v713_v44, %v708_v52 }
 0x2d9   :  { %v716_v41 = vsub.f32 %v558_v36, %v714_v32  ;;  %v717_v8 = vsub.f32 %v559_v9, %v715_v53 }
 0x2db   :  { %v718_v4 = vpack.c.bf16 %v716_v41, %v716_v41  ;;  %v719_v12 = vpack.c.bf16 %v717_v8, %v717_v8 }
 0x2dd   :  { %728 = vmatmul.bf16.vlgmr.msra.gmra.mxu2 %v718_v4  ;;  %741 = vmatmul.bf16.vlgmr.msra.gmra.mxu3 %v719_v12 }
 0x2de   :  { %v697_v14 = vpop.f32.mrf.mxu0  ;;  %v710_v48 = vpop.f32.mrf.mxu1  ;;  %840 = vmatpush.bf16.msra.mxu2 %v1578_v23  ;;  %853 = vmatpush.bf16.msra.mxu3 %v1580_v24 }
 0x2df   :  { %v1995_v48 = vld [vmem:[#allocation28_spill] sm:$0xff] }
 0x2e2   :  { %841 = vmatpush.bf16.msra.mxu2 %v1587_v30  ;;  %854 = vmatpush.bf16.msra.mxu3 %v1589_v31 }
 0x2e6   :  { %842 = vmatpush.bf16.msra.mxu2 %v1599_v38  ;;  %855 = vmatpush.bf16.msra.mxu3 %v1601_v39 }
 0x2ea   :  { %843 = vmatpush.bf16.msra.mxu2 %v1611_v46  ;;  %856 = vmatpush.bf16.msra.mxu3 %v1613_v47 }
 0x2ee   :  { %844 = vmatpush.bf16.msra.mxu2 %v1623_v54  ;;  %857 = vmatpush.bf16.msra.mxu3 %v1625_v55  ;;  %v1996_v54 = vld [vmem:[#allocation29_spill] sm:$0xff]  ;;  %v1997_v55 = vld [vmem:[#allocation30_spill] sm:$0xff] }
 0x2f2   :  { %845 = vmatpush.bf16.msra.mxu2 %v1637_v59  ;;  %858 = vmatpush.bf16.msra.mxu3 %v1639_v60  ;;  %v1998_v59 = vld [vmem:[#allocation31_spill] sm:$0xff]  ;;  %v1999_v60 = vld [vmem:[#allocation32_spill] sm:$0xff] }
 0x2f6   :  { %846 = vmatpush.bf16.msra.mxu2 %v1647_v62  ;;  %859 = vmatpush.bf16.msra.mxu3 %v1649_v63  ;;  %v2000_v62 = vld [vmem:[#allocation33_spill] sm:$0xff]  ;;  %v2001_v63 = vld [vmem:[#allocation34_spill] sm:$0xff] }
 0x2fa   :  { %847 = vmatpush.bf16.msra.mxu2 %v1653_v0  ;;  %860 = vmatpush.bf16.msra.mxu3 %v1655_v1  ;;  %v2002_v0 = vld [vmem:[#allocation35_spill] sm:$0xff] }
 0x360   :  { %v729_v23 = vpop.f32.mrf.mxu2  ;;  %v742_v24 = vpop.f32.mrf.mxu3 }
 0x361   :  { %v730_v30 = vadd.f32 %v1763_v2, %v729_v23 }
 0x363   :  { %v743_v31 = vadd.f32 %v742_v24, %v730_v30 }
 0x365   :  { %v746_v38 = vmax.f32 %v743_v31, 0.0 }
 0x367   :  { %v747_v39 = vpack.c.bf16 %v746_v38, %v746_v38 }
 0x368   :  { %v731_v46 = vpop.f32.mrf.mxu2  ;;  %v744_v47 = vpop.f32.mrf.mxu3 }
 0x369   :  { %756 = vmatmul.bf16.vlgmr.msrb.gmra.mxu0 %v747_v39  ;;  %769 = vmatmul.bf16.vlgmr.msrb.gmra.mxu1 %v747_v39 }
 0x36a   :  { %868 = vmatpush.bf16.msrb.mxu0 %v1659_v6  ;;  %881 = vmatpush.bf16.msrb.mxu1 %v1661_v13 }
 0x36e   :  { %869 = vmatpush.bf16.msrb.mxu0 %v1664_v18  ;;  %882 = vmatpush.bf16.msrb.mxu1 %v1667_v19 }
 0x372   :  { %870 = vmatpush.bf16.msrb.mxu0 %v1670_v28  ;;  %883 = vmatpush.bf16.msrb.mxu1 %v1673_v29 }
 0x376   :  { %871 = vmatpush.bf16.msrb.mxu0 %v1676_v42  ;;  %884 = vmatpush.bf16.msrb.mxu1 %v1679_v43 }
 0x37a   :  { %872 = vmatpush.bf16.msrb.mxu0 %v1995_v48  ;;  %885 = vmatpush.bf16.msrb.mxu1 %v1996_v54 }
 0x37e   :  { %873 = vmatpush.bf16.msrb.mxu0 %v1997_v55  ;;  %886 = vmatpush.bf16.msrb.mxu1 %v1998_v59 }
 0x382   :  { %874 = vmatpush.bf16.msrb.mxu0 %v1999_v60  ;;  %887 = vmatpush.bf16.msrb.mxu1 %v2000_v62 }
 0x386   :  { %875 = vmatpush.bf16.msrb.mxu0 %v2001_v63  ;;  %888 = vmatpush.bf16.msrb.mxu1 %v2002_v0 }
 0x3e6   :  { %v757_v1 = vpop.f32.mrf.mxu0  ;;  %v770_v6 = vpop.f32.mrf.mxu1 }
 0x3e7   :  { %v758_v13 = vadd.f32 %v757_v1, %v1816_v33  ;;  %v771_v18 = vadd.f32 %v770_v6, %v1818_v40 }
 0x3e9   :  { %v774_v19 = vadd.f32 %v758_v13, %v716_v41  ;;  %v775_v28 = vadd.f32 %v771_v18, %v717_v8 }
 0x3eb   :  { %v776_v29 = vpack.c.bf16 %v774_v19, %v774_v19  ;;  %v777_v42 = vpack.c.bf16 %v775_v28, %v775_v28 }
 0x3ed   :  { %786 = vmatmul.bf16.vlgmr.msrb.gmra.mxu2 %v776_v29  ;;  %799 = vmatmul.bf16.vlgmr.msrb.gmra.mxu3 %v777_v42 }
 0x3ee   :  { %v759_v43 = vpop.f32.mrf.mxu0  ;;  %v772_v9 = vpop.f32.mrf.mxu1  ;;  %898 = vmatpush.bf16.msrb.mxu2 %v1716_v5  ;;  %911 = vmatpush.bf16.msrb.mxu3 %v1718_v15 }
 0x3f2   :  { %899 = vmatpush.bf16.msrb.mxu2 %v1723_v20  ;;  %912 = vmatpush.bf16.msrb.mxu3 %v1725_v21 }
 0x3f6   :  { %900 = vmatpush.bf16.msrb.mxu2 %v1731_v26  ;;  %913 = vmatpush.bf16.msrb.mxu3 %v1733_v27 }
 0x3fa   :  { %901 = vmatpush.bf16.msrb.mxu2 %v1739_v34  ;;  %914 = vmatpush.bf16.msrb.mxu3 %v1741_v35  ;;  %v2003_v34 = vld [vmem:[#allocation19_spill] sm:$0xff]  ;;  %v2004_v35 = vld [vmem:[#allocation20_spill] sm:$0xff] }
 0x3fe   :  { %902 = vmatpush.bf16.msrb.mxu2 %v1747_v37  ;;  %915 = vmatpush.bf16.msrb.mxu3 %v1749_v45  ;;  %v2005_v37 = vld [vmem:[#allocation21_spill] sm:$0xff]  ;;  %v2006_v45 = vld [vmem:[#allocation22_spill] sm:$0xff] }
 0x402   :  { %903 = vmatpush.bf16.msrb.mxu2 %v1755_v50  ;;  %916 = vmatpush.bf16.msrb.mxu3 %v1757_v51  ;;  %v2007_v50 = vld [vmem:[#allocation23_spill] sm:$0xff]  ;;  %v2008_v51 = vld [vmem:[#allocation24_spill] sm:$0xff] }
 0x406   :  { %904 = vmatpush.bf16.msrb.mxu2 %v1789_v16  ;;  %917 = vmatpush.bf16.msrb.mxu3 %v1791_v17  ;;  %v2009_v16 = vld [vmem:[#allocation25_spill] sm:$0xff] }
 0x40a   :  { %905 = vmatpush.bf16.msrb.mxu2 %v1795_v22  ;;  %918 = vmatpush.bf16.msrb.mxu3 %v1797_v25 }
 0x470   :  { %v787_v36 = vpop.f32.mrf.mxu2  ;;  %v800_v5 = vpop.f32.mrf.mxu3 }
 0x471   :  { %v801_v15 = vadd.f32 %v800_v5, %v787_v36 }
 0x473   :  { %v804_v20 = vsub.f32 %v801_v15, %v1630_v57 }
 0x475   :  { %v805_v21 = vpack.c.bf16 %v804_v20, %v804_v20 }
 0x477   :  { %814 = vmatmul.bf16.vlgmr.msra.gmra.mxu0 %v805_v21  ;;  %827 = vmatmul.bf16.vlgmr.msra.gmra.mxu1 %v805_v21 }
 0x478   :  { %v789_v26 = vpop.f32.mrf.mxu2  ;;  %v802_v27 = vpop.f32.mrf.mxu3  ;;  %926 = vmatpush.bf16.msra.mxu0 %v1559_v3  ;;  %939 = vmatpush.bf16.msra.mxu1 %v1561_v7  ;;  %v2010_v3 = vld [vmem:[#allocation26_spill] sm:$0xff]  ;;  %v2011_v7 = vld [vmem:[#allocation27_spill] sm:$0xff] }
 0x47c   :  { %927 = vmatpush.bf16.msra.mxu0 %v1564_v10  ;;  %940 = vmatpush.bf16.msra.mxu1 %v1567_v11  ;;  %v833_v10 = vstv %s1235_s13 }
 0x480   :  { %928 = vmatpush.bf16.msra.mxu0 %v2003_v34  ;;  %941 = vmatpush.bf16.msra.mxu1 %v2004_v35 }
 0x484   :  { %929 = vmatpush.bf16.msra.mxu0 %v2005_v37  ;;  %942 = vmatpush.bf16.msra.mxu1 %v2006_v45 }
 0x488   :  { %930 = vmatpush.bf16.msra.mxu0 %v2007_v50  ;;  %943 = vmatpush.bf16.msra.mxu1 %v2008_v51 }
 0x48c   :  { %931 = vmatpush.bf16.msra.mxu0 %v2009_v16  ;;  %944 = vmatpush.bf16.msra.mxu1 %v2010_v3 }
 0x490   :  { %932 = vmatpush.bf16.msra.mxu0 %v2011_v7  ;;  %945 = vmatpush.bf16.msra.mxu1 %v1619_v49 }
 0x494   :  { %933 = vmatpush.bf16.msra.mxu0 %v1628_v56  ;;  %946 = vmatpush.bf16.msra.mxu1 %v1633_v58 }
 0x4f4   :  { %v815_v11 = vpop.f32.mrf.mxu0  ;;  %v828_v17 = vpop.f32.mrf.mxu1 }
 0x4f5   :  { %v834_v22 = vmul.f32 %v833_v10, %v815_v11  ;;  %v835_v25 = vmul.f32 %v833_v10, %v828_v17 }
 0x4f7   :  { %v836_v4 = vsub.f32 %v774_v19, %v834_v22  ;;  %v837_v41 = vsub.f32 %v775_v28, %v835_v25 }
 0x4f9   :  { %v838_v32 = vpack.c.bf16 %v836_v4, %v836_v4  ;;  %v839_v52 = vpack.c.bf16 %v837_v41, %v837_v41 }
 0x4fb   :  { %848 = vmatmul.bf16.vlgmr.msra.gmra.mxu2 %v838_v32  ;;  %861 = vmatmul.bf16.vlgmr.msra.gmra.mxu3 %v839_v52 }
 0x4fc   :  { %v817_v53 = vpop.f32.mrf.mxu0  ;;  %v830_v8 = vpop.f32.mrf.mxu1 }
 0x57e   :  { %v849_v12 = vpop.f32.mrf.mxu2  ;;  %v862_v49 = vpop.f32.mrf.mxu3 }
 0x57f   :  { %v850_v56 = vadd.f32 %v1763_v2, %v849_v12 }
 0x581   :  { %v863_v14 = vadd.f32 %v862_v49, %v850_v56 }
 0x583   :  { %v866_v58 = vmax.f32 %v863_v14, 0.0 }
 0x585   :  { %v867_v44 = vpack.c.bf16 %v866_v58, %v866_v58 }
 0x586   :  { %v851_v61 = vpop.f32.mrf.mxu2  ;;  %v864_v23 = vpop.f32.mrf.mxu3 }
 0x587   :  { %876 = vmatmul.bf16.vlgmr.msrb.gmra.mxu0 %v867_v44  ;;  %889 = vmatmul.bf16.vlgmr.msrb.gmra.mxu1 %v867_v44 }
 0x604   :  { %v877_v24 = vpop.f32.mrf.mxu0  ;;  %v890_v30 = vpop.f32.mrf.mxu1 }
 0x605   :  { %v878_v31 = vadd.f32 %v877_v24, %v1816_v33  ;;  %v891_v38 = vadd.f32 %v890_v30, %v1818_v40  ;;  %v953_v40 = vstv %s1236_s14 }
 0x607   :  { %v894_v39 = vadd.f32 %v878_v31, %v836_v4  ;;  %v895_v46 = vadd.f32 %v891_v38, %v837_v41 }
 0x609   :  { %v896_v47 = vpack.c.bf16 %v894_v39, %v894_v39  ;;  %v897_v48 = vpack.c.bf16 %v895_v46, %v895_v46 }
 0x60b   :  { %906 = vmatmul.bf16.vlgmr.msrb.gmra.mxu2 %v896_v47  ;;  %919 = vmatmul.bf16.vlgmr.msrb.gmra.mxu3 %v897_v48 }
 0x60c   :  { %v879_v2 = vpop.f32.mrf.mxu0  ;;  %v892_v54 = vpop.f32.mrf.mxu1 }
 0x68e   :  { %v907_v55 = vpop.f32.mrf.mxu2  ;;  %v920_v59 = vpop.f32.mrf.mxu3 }
 0x68f   :  { %v921_v60 = vadd.f32 %v920_v59, %v907_v55 }
 0x691   :  { %v924_v62 = vsub.f32 %v921_v60, %v1630_v57 }
 0x693   :  { %v925_v63 = vpack.c.bf16 %v924_v62, %v924_v62 }
 0x695   :  { %934 = vmatmul.bf16.vlgmr.msra.gmra.mxu0 %v925_v63  ;;  %947 = vmatmul.bf16.vlgmr.msra.gmra.mxu1 %v925_v63 }
 0x696   :  { %v909_v0 = vpop.f32.mrf.mxu2  ;;  %v922_v33 = vpop.f32.mrf.mxu3 }
 0x712   :  { %v935_v1 = vpop.f32.mrf.mxu0  ;;  %v948_v6 = vpop.f32.mrf.mxu1 }
 0x713   :  { %v954_v13 = vmul.f32 %v953_v40, %v935_v1  ;;  %v955_v18 = vmul.f32 %v953_v40, %v948_v6 }
 0x715   :  { %v956_v19 = vsub.f32 %v894_v39, %v954_v13  ;;  %v957_v28 = vsub.f32 %v895_v46, %v955_v18 }
 0x717   :  { %958 = vst [vmem:[#allocation13] sm:$0xff] %v956_v19 }
 0x718   :  { %959 = vst [vmem:[#allocation13 + $0x8] sm:$0xff] %v957_v28 }
 0x719   :  { %970 = dma.vmem_to_hbm [thread:$0]  %s966_s15, 256, %s968_s18, [#allocation6]  }
 0x71a   :  { %v937_v57 = vpop.f32.mrf.mxu0  ;;  %v950_v29 = vpop.f32.mrf.mxu1 }
 0x71b   :  { %1477 = dma.done.wait [#allocation6], 256  }
 0x71c   :  { %1478 = vsyncadd [#allocation6], 4294967040 }
 0x71d   :  { %975 = vsyncpa [#allocation5], 1 }
 0x71e   :  { %976 = vsyncpa [#allocation8], 1 }
 0x71f   :  { %977 = vsyncpa [#allocation11], 1 }
 0x720   :  { %978 = vsyncpa [#allocation6], 1 }

</bundles_post_ra>
